<compile_context>
chip_gen: v7x
topology: tpu7x:2x2x1
jax: 0.10.0
libtpu: 0.0.40
codegen_flags: <defaults>
</compile_context>

<pallas_src>
import math
import functools

import jax
import jax.numpy as jnp
from jax.experimental import pallas as pl

# ----- synthetic BERT + CNN-head config (small, deterministic) -----
VOCAB = 30
TYPE_VOCAB = 2
MAX_POS = 16
HIDDEN = 32            # hidden_size
N_HEADS = 2
HEAD_DIM = HIDDEN // N_HEADS
INTERMEDIATE = 64
N_LAYERS = 2
N_CLASS = 3            # n_class
LN_EPS = 1e-12

MAXLEN = 8             # maxlen (sequence length seen by the CNN head)
WINDOW_SIZES = (2, 3, 4)
N_FILTERS = 16         # num_of_filters

MXU_DTYPE = jnp.bfloat16   # MXU operand dtype; accumulation stays f32


def _full_spec(shape):
    nd = len(shape)
    return pl.BlockSpec(shape, lambda i, _nd=nd: (0,) * _nd)


# ---------------- the single fused kernel ----------------

def _fused_kernel(x_ref, bias_ref, *refs, treedef, n_params):
    param_refs = refs[:n_params]
    out_ref = refs[n_params]
    p = jax.tree_util.tree_unflatten(treedef, list(param_refs))

    B = bias_ref.shape[0]
    S = bias_ref.shape[2]
    H, NH, D = HIDDEN, N_HEADS, HEAD_DIM

    def matmul(a, w_ref, b_ref):
        y = jnp.dot(a.astype(MXU_DTYPE), w_ref[...], preferred_element_type=jnp.float32)
        return y + b_ref[...]

    def layernorm(x, lnp):
        mu = jnp.mean(x, axis=-1, keepdims=True)
        var = jnp.mean(jnp.square(x - mu), axis=-1, keepdims=True)
        return (x - mu) * jax.lax.rsqrt(var + LN_EPS) * lnp["g"][...] + lnp["b"][...]

    # --- embeddings LayerNorm ---
    x = layernorm(x_ref[...], p["emb_ln"])                     # (B*S, H) f32

    bias = bias_ref[...]                                       # (B, 1, S) additive key mask
    scale = 1.0 / math.sqrt(D)

    # --- encoder layers (unrolled at trace time) ---
    for lyr in p["layers"]:
        qkv = matmul(x, lyr["wqkv"], lyr["bqkv"])              # (B*S, 3H), fused Q/K/V
        wo = lyr["wo"][...]                                    # (H, H) bf16
        attn = lyr["bo"][...]                                  # (1, H); accumulates head outputs
        for h in range(NH):
            q = qkv[:, 0 * H + h * D:0 * H + (h + 1) * D].reshape(B, S, D)
            k = qkv[:, 1 * H + h * D:1 * H + (h + 1) * D].reshape(B, S, D)
            v = qkv[:, 2 * H + h * D:2 * H + (h + 1) * D].reshape(B, S, D)
            s = jnp.einsum("bqd,bkd->bqk", q.astype(MXU_DTYPE), k.astype(MXU_DTYPE),
                           preferred_element_type=jnp.float32)
            s = s * scale + bias
            s = s - jnp.max(s, axis=-1, keepdims=True)
            e = jnp.exp(s)
            prob = e * pl.reciprocal(jnp.sum(e, axis=-1, keepdims=True), approx=True)
            ctx = jnp.einsum("bqk,bkd->bqd", prob.astype(MXU_DTYPE), v.astype(MXU_DTYPE),
                             preferred_element_type=jnp.float32)
            ctx2d = ctx.reshape(B * S, D)
            # Head merge without concat/transpose: sum of per-head output projections
            # equals concat(ctx_heads) @ Wo.
            attn = attn + jnp.dot(ctx2d.astype(MXU_DTYPE), wo[h * D:(h + 1) * D, :],
                                  preferred_element_type=jnp.float32)
        x = layernorm(x + attn, lyr["ln1"])

        # FFN: gelu(x W1 + b1) W2 + b2, intermediate never leaves VMEM/vregs.
        # NOTE: PyTorch/HF BERT uses exact erf-GELU; tanh approximation differs negligibly.
        ffn = jax.nn.gelu(matmul(x, lyr["w1"], lyr["b1"]), approximate=True)
        ffn = matmul(ffn, lyr["w2"], lyr["b2"])
        x = layernorm(x + ffn, lyr["ln2"])

    # TODO(synk): nn.Dropout(0.5) on last_hidden_state (and BERT's internal dropouts) are
    # identity at inference, so no kernel work is emitted for them.

    # --- text-CNN head: Conv1d(H->F, kernel h) over time + ReLU + MaxPool1d(S-h+1) ---
    x_bf = x.astype(MXU_DTYPE)                                 # (B*S, H)
    wc = p["cls"]["w"][...]                                    # (F*n_windows, n_class) bf16
    logits = jnp.zeros((B, N_CLASS), jnp.float32) + p["cls"]["b"][...]
    for i, conv in enumerate(p["convs"]):
        h_size = conv["w"].shape[0]
        F = conv["w"].shape[2]
        T = S - h_size + 1
        acc = jnp.zeros((B, T, F), jnp.float32)
        for j in range(h_size):
            # Conv1d tap j == shifted matmul against the (H, F) tap weight.
            yj = jnp.dot(x_bf, conv["w"][j], preferred_element_type=jnp.float32)   # (B*S, F)
            acc = acc + yj.reshape(B, S, F)[:, j:j + T, :]
        acc = jnp.maximum(acc + conv["b"][...].reshape(1, 1, F), 0.0)              # ReLU
        feat = jnp.max(acc, axis=1)                                                # global max-pool
        # Concat-free classifier: sum of per-window partial matmuls == concat(feats) @ Wc.
        logits = logits + jnp.dot(feat.astype(MXU_DTYPE), wc[i * F:(i + 1) * F, :],
                                  preferred_element_type=jnp.float32)

    # softmax(dim=-1); exact division so rows sum to 1.
    logits = logits - jnp.max(logits, axis=-1, keepdims=True)
    e = jnp.exp(logits)
    out_ref[...] = e / jnp.sum(e, axis=-1, keepdims=True)


# ---------------- parameter init (deterministic, synthetic) ----------------

def init_params(key):
    keys = iter(jax.random.split(key, 64))

    def nk():
        return next(keys)

    def w_init(shape):
        # matmul weights stored in bf16 (MXU operand dtype); biases / LN params stay f32.
        return (0.02 * jax.random.normal(nk(), shape, jnp.float32)).astype(MXU_DTYPE)

    def ln_p():
        return {"g": jnp.ones((1, HIDDEN), jnp.float32),
                "b": jnp.zeros((1, HIDDEN), jnp.float32)}

    def layer():
        return {
            "wqkv": w_init((HIDDEN, 3 * HIDDEN)),
            "bqkv": jnp.zeros((1, 3 * HIDDEN), jnp.float32),
            "wo": w_init((HIDDEN, HIDDEN)),
            "bo": jnp.zeros((1, HIDDEN), jnp.float32),
            "ln1": ln_p(),
            "w1": w_init((HIDDEN, INTERMEDIATE)),
            "b1": jnp.zeros((1, INTERMEDIATE), jnp.float32),
            "w2": w_init((INTERMEDIATE, HIDDEN)),
            "b2": jnp.zeros((1, HIDDEN), jnp.float32),
            "ln2": ln_p(),
        }

    return {
        # embedding tables are only used by the wrapper-side gather (XLA glue)
        "emb": {
            "word": 0.02 * jax.random.normal(nk(), (VOCAB, HIDDEN), jnp.float32),
            "pos": 0.02 * jax.random.normal(nk(), (MAX_POS, HIDDEN), jnp.float32),
            "type": 0.02 * jax.random.normal(nk(), (TYPE_VOCAB, HIDDEN), jnp.float32),
        },
        # everything below lives inside the fused kernel
        "net": {
            "emb_ln": ln_p(),
            "layers": [layer() for _ in range(N_LAYERS)],
            "convs": [{"w": w_init((h, HIDDEN, N_FILTERS)),          # (tap, in, out) layout
                       "b": jnp.zeros((1, N_FILTERS), jnp.float32)}
                      for h in WINDOW_SIZES],
            "cls": {"w": w_init((N_FILTERS * len(WINDOW_SIZES), N_CLASS)),
                    "b": jnp.zeros((1, N_CLASS), jnp.float32)},
        },
    }


# ---------------- BertCNN.forward ----------------

def bert_cnn_forward(params, input_ids, attention_mask, token_type_ids):
    B, S = input_ids.shape

    # embedding gathers stay as XLA glue; everything else runs in the single fused kernel
    pos_ids = jnp.arange(S)
    x = (params["emb"]["word"][input_ids]
         + params["emb"]["pos"][pos_ids][None, :, :]
         + params["emb"]["type"][token_type_ids])
    x = x.reshape(B * S, HIDDEN).astype(jnp.float32)

    attn_bias = ((1.0 - attention_mask.astype(jnp.float32)) * -10000.0)[:, None, :]  # (B,1,S)

    flat, treedef = jax.tree_util.tree_flatten(params["net"])
    inputs = [x, attn_bias] + flat

    kernel = functools.partial(_fused_kernel, treedef=treedef, n_params=len(flat))
    return pl.pallas_call(
        kernel,
        out_shape=jax.ShapeDtypeStruct((B, N_CLASS), jnp.float32),
        grid=(1,),
        in_specs=[_full_spec(a.shape) for a in inputs],
        out_specs=_full_spec((B, N_CLASS)),
    )(*inputs)


if __name__ == "__main__":
    key = jax.random.PRNGKey(0)
    k_ids, k_params = jax.random.split(key, 2)

    B, S = 2, MAXLEN
    input_ids = jax.random.randint(k_ids, (B, S), 0, VOCAB, dtype=jnp.int32)
    attention_mask = jnp.ones((B, S), jnp.int32).at[1, 6:].set(0)   # pad the tail of seq 1
    token_type_ids = jnp.zeros((B, S), jnp.int32)

    params = init_params(k_params)

    probs = jax.jit(bert_cnn_forward)(params, input_ids, attention_mask, token_type_ids)
    probs = jax.block_until_ready(probs)

    assert probs.shape == (B, N_CLASS), probs.shape
    assert bool(jnp.allclose(jnp.sum(probs, axis=-1), 1.0, atol=1e-5))
    print("KERNEL_OK")
</pallas_src>

<mosaic_0001>
module attributes {stable_mosaic.version = 11 : i64} {
  func.func @_fused_kernel(%arg0: i32, %arg1: memref<16x32xf32, #tpu.memory_space<vmem>>, %arg2: memref<2x1x8xf32, #tpu.memory_space<vmem>>, %arg3: memref<1x3xf32, #tpu.memory_space<vmem>>, %arg4: memref<48x3xbf16, #tpu.memory_space<vmem>>, %arg5: memref<1x16xf32, #tpu.memory_space<vmem>>, %arg6: memref<2x32x16xbf16, #tpu.memory_space<vmem>>, %arg7: memref<1x16xf32, #tpu.memory_space<vmem>>, %arg8: memref<3x32x16xbf16, #tpu.memory_space<vmem>>, %arg9: memref<1x16xf32, #tpu.memory_space<vmem>>, %arg10: memref<4x32x16xbf16, #tpu.memory_space<vmem>>, %arg11: memref<1x32xf32, #tpu.memory_space<vmem>>, %arg12: memref<1x32xf32, #tpu.memory_space<vmem>>, %arg13: memref<1x64xf32, #tpu.memory_space<vmem>>, %arg14: memref<1x32xf32, #tpu.memory_space<vmem>>, %arg15: memref<1x32xf32, #tpu.memory_space<vmem>>, %arg16: memref<1x96xf32, #tpu.memory_space<vmem>>, %arg17: memref<1x32xf32, #tpu.memory_space<vmem>>, %arg18: memref<1x32xf32, #tpu.memory_space<vmem>>, %arg19: memref<1x32xf32, #tpu.memory_space<vmem>>, %arg20: memref<1x32xf32, #tpu.memory_space<vmem>>, %arg21: memref<32x64xbf16, #tpu.memory_space<vmem>>, %arg22: memref<64x32xbf16, #tpu.memory_space<vmem>>, %arg23: memref<32x32xbf16, #tpu.memory_space<vmem>>, %arg24: memref<32x96xbf16, #tpu.memory_space<vmem>>, %arg25: memref<1x64xf32, #tpu.memory_space<vmem>>, %arg26: memref<1x32xf32, #tpu.memory_space<vmem>>, %arg27: memref<1x32xf32, #tpu.memory_space<vmem>>, %arg28: memref<1x96xf32, #tpu.memory_space<vmem>>, %arg29: memref<1x32xf32, #tpu.memory_space<vmem>>, %arg30: memref<1x32xf32, #tpu.memory_space<vmem>>, %arg31: memref<1x32xf32, #tpu.memory_space<vmem>>, %arg32: memref<1x32xf32, #tpu.memory_space<vmem>>, %arg33: memref<32x64xbf16, #tpu.memory_space<vmem>>, %arg34: memref<64x32xbf16, #tpu.memory_space<vmem>>, %arg35: memref<32x32xbf16, #tpu.memory_space<vmem>>, %arg36: memref<32x96xbf16, #tpu.memory_space<vmem>>, %arg37: memref<2x3xf32, #tpu.memory_space<vmem>>) attributes {dimension_semantics = [#tpu.dimension_semantics<arbitrary>], iteration_bounds = array<i64: 1>, scalar_prefetch = 0 : i64, scratch_operands = 0 : i64, tpu.core_type = #tpu.core_type<tc>, window_params = [{pipeline_mode = #tpu.pipeline_mode<synchronous>, transform_indices = @transform_0, window_bounds = array<i64: 16, 32>}, {pipeline_mode = #tpu.pipeline_mode<synchronous>, transform_indices = @transform_1, window_bounds = array<i64: 2, 1, 8>}, {pipeline_mode = #tpu.pipeline_mode<synchronous>, transform_indices = @transform_2, window_bounds = array<i64: 1, 3>}, {pipeline_mode = #tpu.pipeline_mode<synchronous>, transform_indices = @transform_3, window_bounds = array<i64: 48, 3>}, {pipeline_mode = #tpu.pipeline_mode<synchronous>, transform_indices = @transform_4, window_bounds = array<i64: 1, 16>}, {pipeline_mode = #tpu.pipeline_mode<synchronous>, transform_indices = @transform_5, window_bounds = array<i64: 2, 32, 16>}, {pipeline_mode = #tpu.pipeline_mode<synchronous>, transform_indices = @transform_6, window_bounds = array<i64: 1, 16>}, {pipeline_mode = #tpu.pipeline_mode<synchronous>, transform_indices = @transform_7, window_bounds = array<i64: 3, 32, 16>}, {pipeline_mode = #tpu.pipeline_mode<synchronous>, transform_indices = @transform_8, window_bounds = array<i64: 1, 16>}, {pipeline_mode = #tpu.pipeline_mode<synchronous>, transform_indices = @transform_9, window_bounds = array<i64: 4, 32, 16>}, {pipeline_mode = #tpu.pipeline_mode<synchronous>, transform_indices = @transform_10, window_bounds = array<i64: 1, 32>}, {pipeline_mode = #tpu.pipeline_mode<synchronous>, transform_indices = @transform_11, window_bounds = array<i64: 1, 32>}, {pipeline_mode = #tpu.pipeline_mode<synchronous>, transform_indices = @transform_12, window_bounds = array<i64: 1, 64>}, {pipeline_mode = #tpu.pipeline_mode<synchronous>, transform_indices = @transform_13, window_bounds = array<i64: 1, 32>}, {pipeline_mode = #tpu.pipeline_mode<synchronous>, transform_indices = @transform_14, window_bounds = array<i64: 1, 32>}, {pipeline_mode = #tpu.pipeline_mode<synchronous>, transform_indices = @transform_15, window_bounds = array<i64: 1, 96>}, {pipeline_mode = #tpu.pipeline_mode<synchronous>, transform_indices = @transform_16, window_bounds = array<i64: 1, 32>}, {pipeline_mode = #tpu.pipeline_mode<synchronous>, transform_indices = @transform_17, window_bounds = array<i64: 1, 32>}, {pipeline_mode = #tpu.pipeline_mode<synchronous>, transform_indices = @transform_18, window_bounds = array<i64: 1, 32>}, {pipeline_mode = #tpu.pipeline_mode<synchronous>, transform_indices = @transform_19, window_bounds = array<i64: 1, 32>}, {pipeline_mode = #tpu.pipeline_mode<synchronous>, transform_indices = @transform_20, window_bounds = array<i64: 32, 64>}, {pipeline_mode = #tpu.pipeline_mode<synchronous>, transform_indices = @transform_21, window_bounds = array<i64: 64, 32>}, {pipeline_mode = #tpu.pipeline_mode<synchronous>, transform_indices = @transform_22, window_bounds = array<i64: 32, 32>}, {pipeline_mode = #tpu.pipeline_mode<synchronous>, transform_indices = @transform_23, window_bounds = array<i64: 32, 96>}, {pipeline_mode = #tpu.pipeline_mode<synchronous>, transform_indices = @transform_24, window_bounds = array<i64: 1, 64>}, {pipeline_mode = #tpu.pipeline_mode<synchronous>, transform_indices = @transform_25, window_bounds = array<i64: 1, 32>}, {pipeline_mode = #tpu.pipeline_mode<synchronous>, transform_indices = @transform_26, window_bounds = array<i64: 1, 32>}, {pipeline_mode = #tpu.pipeline_mode<synchronous>, transform_indices = @transform_27, window_bounds = array<i64: 1, 96>}, {pipeline_mode = #tpu.pipeline_mode<synchronous>, transform_indices = @transform_28, window_bounds = array<i64: 1, 32>}, {pipeline_mode = #tpu.pipeline_mode<synchronous>, transform_indices = @transform_29, window_bounds = array<i64: 1, 32>}, {pipeline_mode = #tpu.pipeline_mode<synchronous>, transform_indices = @transform_30, window_bounds = array<i64: 1, 32>}, {pipeline_mode = #tpu.pipeline_mode<synchronous>, transform_indices = @transform_31, window_bounds = array<i64: 1, 32>}, {pipeline_mode = #tpu.pipeline_mode<synchronous>, transform_indices = @transform_32, window_bounds = array<i64: 32, 64>}, {pipeline_mode = #tpu.pipeline_mode<synchronous>, transform_indices = @transform_33, window_bounds = array<i64: 64, 32>}, {pipeline_mode = #tpu.pipeline_mode<synchronous>, transform_indices = @transform_34, window_bounds = array<i64: 32, 32>}, {pipeline_mode = #tpu.pipeline_mode<synchronous>, transform_indices = @transform_35, window_bounds = array<i64: 32, 96>}, {pipeline_mode = #tpu.pipeline_mode<synchronous>, transform_indices = @transform_36, window_bounds = array<i64: 2, 3>}]} {
    %c0 = arith.constant 0 : index
    %c0_0 = arith.constant 0 : index
    %0 = vector.load %arg1[%c0, %c0_0] : memref<16x32xf32, #tpu.memory_space<vmem>>, vector<16x32xf32>
    %cst = arith.constant dense<0.000000e+00> : vector<16xf32>
    %1 = vector.multi_reduction <add>, %0, %cst [1] : vector<16x32xf32> to vector<16xf32>
    %2 = vector.shape_cast %1 : vector<16xf32> to vector<16x1xf32>
    %cst_1 = arith.constant 3.200000e+01 : f32
    %3 = vector.broadcast %cst_1 : f32 to vector<16x1xf32>
    %4 = arith.divf %2, %3 : vector<16x1xf32>
    %5 = vector.broadcast %4 : vector<16x1xf32> to vector<16x32xf32>
    %6 = arith.subf %0, %5 : vector<16x32xf32>
    %7 = arith.mulf %6, %6 : vector<16x32xf32>
    %cst_2 = arith.constant dense<0.000000e+00> : vector<16xf32>
    %8 = vector.multi_reduction <add>, %7, %cst_2 [1] : vector<16x32xf32> to vector<16xf32>
    %9 = vector.shape_cast %8 : vector<16xf32> to vector<16x1xf32>
    %cst_3 = arith.constant 3.200000e+01 : f32
    %10 = vector.broadcast %cst_3 : f32 to vector<16x1xf32>
    %11 = arith.divf %9, %10 : vector<16x1xf32>
    %12 = vector.broadcast %4 : vector<16x1xf32> to vector<16x32xf32>
    %13 = arith.subf %0, %12 : vector<16x32xf32>
    %cst_4 = arith.constant 9.99999996E-13 : f32
    %14 = vector.broadcast %cst_4 : f32 to vector<16x1xf32>
    %15 = arith.addf %11, %14 : vector<16x1xf32>
    %16 = math.rsqrt %15 : vector<16x1xf32>
    %17 = vector.broadcast %16 : vector<16x1xf32> to vector<16x32xf32>
    %18 = arith.mulf %13, %17 : vector<16x32xf32>
    %c0_5 = arith.constant 0 : index
    %c0_6 = arith.constant 0 : index
    %19 = vector.load %arg12[%c0_5, %c0_6] : memref<1x32xf32, #tpu.memory_space<vmem>>, vector<1x32xf32>
    %20 = vector.broadcast %19 : vector<1x32xf32> to vector<16x32xf32>
    %21 = arith.mulf %18, %20 : vector<16x32xf32>
    %c0_7 = arith.constant 0 : index
    %c0_8 = arith.constant 0 : index
    %22 = vector.load %arg11[%c0_7, %c0_8] : memref<1x32xf32, #tpu.memory_space<vmem>>, vector<1x32xf32>
    %23 = vector.broadcast %22 : vector<1x32xf32> to vector<16x32xf32>
    %24 = arith.addf %21, %23 : vector<16x32xf32>
    %c0_9 = arith.constant 0 : index
    %c0_10 = arith.constant 0 : index
    %c0_11 = arith.constant 0 : index
    %25 = vector.load %arg2[%c0_9, %c0_10, %c0_11] : memref<2x1x8xf32, #tpu.memory_space<vmem>>, vector<2x1x8xf32>
    %26 = arith.truncf %24 : vector<16x32xf32> to vector<16x32xbf16>
    %c0_12 = arith.constant 0 : index
    %c0_13 = arith.constant 0 : index
    %27 = vector.load %arg24[%c0_12, %c0_13] : memref<32x96xbf16, #tpu.memory_space<vmem>>, vector<32x96xbf16>
    %cst_14 = arith.constant dense<0.000000e+00> : vector<16x96xf32>
    %28 = tpu.matmul %26, %27, %cst_14 {dimension_numbers = #tpu.dot_dimension_numbers<[1], [0], [0], [1], [0, 0, 1, 1], [], []>} : vector<16x32xbf16>, vector<32x96xbf16>, vector<16x96xf32> -> vector<16x96xf32>
    %c0_15 = arith.constant 0 : index
    %c0_16 = arith.constant 0 : index
    %29 = vector.load %arg16[%c0_15, %c0_16] : memref<1x96xf32, #tpu.memory_space<vmem>>, vector<1x96xf32>
    %30 = vector.broadcast %29 : vector<1x96xf32> to vector<16x96xf32>
    %31 = arith.addf %28, %30 : vector<16x96xf32>
    %c0_17 = arith.constant 0 : index
    %c0_18 = arith.constant 0 : index
    %32 = vector.load %arg23[%c0_17, %c0_18] : memref<32x32xbf16, #tpu.memory_space<vmem>>, vector<32x32xbf16>
    %c0_19 = arith.constant 0 : index
    %c0_20 = arith.constant 0 : index
    %33 = vector.load %arg15[%c0_19, %c0_20] : memref<1x32xf32, #tpu.memory_space<vmem>>, vector<1x32xf32>
    %34 = vector.extract_strided_slice %31 {offsets = [0, 0], sizes = [16, 16], strides = [1, 1]} : vector<16x96xf32> to vector<16x16xf32>
    %35 = vector.shape_cast %34 : vector<16x16xf32> to vector<2x8x16xf32>
    %36 = vector.extract_strided_slice %31 {offsets = [0, 32], sizes = [16, 16], strides = [1, 1]} : vector<16x96xf32> to vector<16x16xf32>
    %37 = vector.shape_cast %36 : vector<16x16xf32> to vector<2x8x16xf32>
    %38 = vector.extract_strided_slice %31 {offsets = [0, 64], sizes = [16, 16], strides = [1, 1]} : vector<16x96xf32> to vector<16x16xf32>
    %39 = vector.shape_cast %38 : vector<16x16xf32> to vector<2x8x16xf32>
    %40 = arith.truncf %35 : vector<2x8x16xf32> to vector<2x8x16xbf16>
    %41 = arith.truncf %37 : vector<2x8x16xf32> to vector<2x8x16xbf16>
    "tpu.trace_start"() <{level = 10 : i32, message = "bqd,bkd->bqk"}> : () -> ()
    %cst_21 = arith.constant dense<0.000000e+00> : vector<2x8x8xf32>
    %42 = tpu.matmul %40, %41, %cst_21 {dimension_numbers = #tpu.dot_dimension_numbers<[2], [2], [1], [1], [0, 0, 0, 1, 1, 1], [0], [0]>} : vector<2x8x16xbf16>, vector<2x8x16xbf16>, vector<2x8x8xf32> -> vector<2x8x8xf32>
    "tpu.trace_stop"() : () -> ()
    %cst_22 = arith.constant 2.500000e-01 : f32
    %43 = vector.broadcast %cst_22 : f32 to vector<2x8x8xf32>
    %44 = arith.mulf %42, %43 : vector<2x8x8xf32>
    %45 = vector.broadcast %25 : vector<2x1x8xf32> to vector<2x8x8xf32>
    %46 = arith.addf %44, %45 : vector<2x8x8xf32>
    %cst_23 = arith.constant dense<0xFF800000> : vector<2x8xf32>
    %47 = vector.multi_reduction <maximumf>, %46, %cst_23 [2] : vector<2x8x8xf32> to vector<2x8xf32>
    %48 = vector.shape_cast %47 : vector<2x8xf32> to vector<2x8x1xf32>
    %49 = vector.broadcast %48 : vector<2x8x1xf32> to vector<2x8x8xf32>
    %50 = arith.subf %46, %49 : vector<2x8x8xf32>
    %51 = math.exp %50 : vector<2x8x8xf32>
    %cst_24 = arith.constant dense<0.000000e+00> : vector<2x8xf32>
    %52 = vector.multi_reduction <add>, %51, %cst_24 [2] : vector<2x8x8xf32> to vector<2x8xf32>
    %53 = vector.shape_cast %52 : vector<2x8xf32> to vector<2x8x1xf32>
    %54 = tpu.reciprocal %53 {approx = true} : vector<2x8x1xf32> -> vector<2x8x1xf32>
    %55 = vector.broadcast %54 : vector<2x8x1xf32> to vector<2x8x8xf32>
    %56 = arith.mulf %51, %55 : vector<2x8x8xf32>
    %57 = arith.truncf %56 : vector<2x8x8xf32> to vector<2x8x8xbf16>
    %58 = arith.truncf %39 : vector<2x8x16xf32> to vector<2x8x16xbf16>
    "tpu.trace_start"() <{level = 10 : i32, message = "bqk,bkd->bqd"}> : () -> ()
    %cst_25 = arith.constant dense<0.000000e+00> : vector<2x8x16xf32>
    %59 = tpu.matmul %57, %58, %cst_25 {dimension_numbers = #tpu.dot_dimension_numbers<[2], [1], [1], [2], [0, 0, 0, 1, 1, 2], [0], [0]>} : vector<2x8x8xbf16>, vector<2x8x16xbf16>, vector<2x8x16xf32> -> vector<2x8x16xf32>
    "tpu.trace_stop"() : () -> ()
    %60 = vector.shape_cast %59 : vector<2x8x16xf32> to vector<16x16xf32>
    %61 = arith.truncf %60 : vector<16x16xf32> to vector<16x16xbf16>
    %62 = vector.extract_strided_slice %32 {offsets = [0, 0], sizes = [16, 32], strides = [1, 1]} : vector<32x32xbf16> to vector<16x32xbf16>
    %cst_26 = arith.constant dense<0.000000e+00> : vector<16x32xf32>
    %63 = tpu.matmul %61, %62, %cst_26 {dimension_numbers = #tpu.dot_dimension_numbers<[1], [0], [0], [1], [0, 0, 1, 1], [], []>} : vector<16x16xbf16>, vector<16x32xbf16>, vector<16x32xf32> -> vector<16x32xf32>
    %64 = vector.broadcast %33 : vector<1x32xf32> to vector<16x32xf32>
    %65 = arith.addf %64, %63 : vector<16x32xf32>
    %66 = vector.extract_strided_slice %31 {offsets = [0, 16], sizes = [16, 16], strides = [1, 1]} : vector<16x96xf32> to vector<16x16xf32>
    %67 = vector.shape_cast %66 : vector<16x16xf32> to vector<2x8x16xf32>
    %68 = vector.extract_strided_slice %31 {offsets = [0, 48], sizes = [16, 16], strides = [1, 1]} : vector<16x96xf32> to vector<16x16xf32>
    %69 = vector.shape_cast %68 : vector<16x16xf32> to vector<2x8x16xf32>
    %70 = vector.extract_strided_slice %31 {offsets = [0, 80], sizes = [16, 16], strides = [1, 1]} : vector<16x96xf32> to vector<16x16xf32>
    %71 = vector.shape_cast %70 : vector<16x16xf32> to vector<2x8x16xf32>
    %72 = arith.truncf %67 : vector<2x8x16xf32> to vector<2x8x16xbf16>
    %73 = arith.truncf %69 : vector<2x8x16xf32> to vector<2x8x16xbf16>
    "tpu.trace_start"() <{level = 10 : i32, message = "bqd,bkd->bqk"}> : () -> ()
    %cst_27 = arith.constant dense<0.000000e+00> : vector<2x8x8xf32>
    %74 = tpu.matmul %72, %73, %cst_27 {dimension_numbers = #tpu.dot_dimension_numbers<[2], [2], [1], [1], [0, 0, 0, 1, 1, 1], [0], [0]>} : vector<2x8x16xbf16>, vector<2x8x16xbf16>, vector<2x8x8xf32> -> vector<2x8x8xf32>
    "tpu.trace_stop"() : () -> ()
    %cst_28 = arith.constant 2.500000e-01 : f32
    %75 = vector.broadcast %cst_28 : f32 to vector<2x8x8xf32>
    %76 = arith.mulf %74, %75 : vector<2x8x8xf32>
    %77 = vector.broadcast %25 : vector<2x1x8xf32> to vector<2x8x8xf32>
    %78 = arith.addf %76, %77 : vector<2x8x8xf32>
    %cst_29 = arith.constant dense<0xFF800000> : vector<2x8xf32>
    %79 = vector.multi_reduction <maximumf>, %78, %cst_29 [2] : vector<2x8x8xf32> to vector<2x8xf32>
    %80 = vector.shape_cast %79 : vector<2x8xf32> to vector<2x8x1xf32>
    %81 = vector.broadcast %80 : vector<2x8x1xf32> to vector<2x8x8xf32>
    %82 = arith.subf %78, %81 : vector<2x8x8xf32>
    %83 = math.exp %82 : vector<2x8x8xf32>
    %cst_30 = arith.constant dense<0.000000e+00> : vector<2x8xf32>
    %84 = vector.multi_reduction <add>, %83, %cst_30 [2] : vector<2x8x8xf32> to vector<2x8xf32>
    %85 = vector.shape_cast %84 : vector<2x8xf32> to vector<2x8x1xf32>
    %86 = tpu.reciprocal %85 {approx = true} : vector<2x8x1xf32> -> vector<2x8x1xf32>
    %87 = vector.broadcast %86 : vector<2x8x1xf32> to vector<2x8x8xf32>
    %88 = arith.mulf %83, %87 : vector<2x8x8xf32>
    %89 = arith.truncf %88 : vector<2x8x8xf32> to vector<2x8x8xbf16>
    %90 = arith.truncf %71 : vector<2x8x16xf32> to vector<2x8x16xbf16>
    "tpu.trace_start"() <{level = 10 : i32, message = "bqk,bkd->bqd"}> : () -> ()
    %cst_31 = arith.constant dense<0.000000e+00> : vector<2x8x16xf32>
    %91 = tpu.matmul %89, %90, %cst_31 {dimension_numbers = #tpu.dot_dimension_numbers<[2], [1], [1], [2], [0, 0, 0, 1, 1, 2], [0], [0]>} : vector<2x8x8xbf16>, vector<2x8x16xbf16>, vector<2x8x16xf32> -> vector<2x8x16xf32>
    "tpu.trace_stop"() : () -> ()
    %92 = vector.shape_cast %91 : vector<2x8x16xf32> to vector<16x16xf32>
    %93 = arith.truncf %92 : vector<16x16xf32> to vector<16x16xbf16>
    %94 = vector.extract_strided_slice %32 {offsets = [16, 0], sizes = [16, 32], strides = [1, 1]} : vector<32x32xbf16> to vector<16x32xbf16>
    %cst_32 = arith.constant dense<0.000000e+00> : vector<16x32xf32>
    %95 = tpu.matmul %93, %94, %cst_32 {dimension_numbers = #tpu.dot_dimension_numbers<[1], [0], [0], [1], [0, 0, 1, 1], [], []>} : vector<16x16xbf16>, vector<16x32xbf16>, vector<16x32xf32> -> vector<16x32xf32>
    %96 = arith.addf %65, %95 : vector<16x32xf32>
    %97 = arith.addf %24, %96 : vector<16x32xf32>
    %cst_33 = arith.constant dense<0.000000e+00> : vector<16xf32>
    %98 = vector.multi_reduction <add>, %97, %cst_33 [1] : vector<16x32xf32> to vector<16xf32>
    %99 = vector.shape_cast %98 : vector<16xf32> to vector<16x1xf32>
    %cst_34 = arith.constant 3.200000e+01 : f32
    %100 = vector.broadcast %cst_34 : f32 to vector<16x1xf32>
    %101 = arith.divf %99, %100 : vector<16x1xf32>
    %102 = vector.broadcast %101 : vector<16x1xf32> to vector<16x32xf32>
    %103 = arith.subf %97, %102 : vector<16x32xf32>
    %104 = arith.mulf %103, %103 : vector<16x32xf32>
    %cst_35 = arith.constant dense<0.000000e+00> : vector<16xf32>
    %105 = vector.multi_reduction <add>, %104, %cst_35 [1] : vector<16x32xf32> to vector<16xf32>
    %106 = vector.shape_cast %105 : vector<16xf32> to vector<16x1xf32>
    %cst_36 = arith.constant 3.200000e+01 : f32
    %107 = vector.broadcast %cst_36 : f32 to vector<16x1xf32>
    %108 = arith.divf %106, %107 : vector<16x1xf32>
    %109 = vector.broadcast %101 : vector<16x1xf32> to vector<16x32xf32>
    %110 = arith.subf %97, %109 : vector<16x32xf32>
    %cst_37 = arith.constant 9.99999996E-13 : f32
    %111 = vector.broadcast %cst_37 : f32 to vector<16x1xf32>
    %112 = arith.addf %108, %111 : vector<16x1xf32>
    %113 = math.rsqrt %112 : vector<16x1xf32>
    %114 = vector.broadcast %113 : vector<16x1xf32> to vector<16x32xf32>
    %115 = arith.mulf %110, %114 : vector<16x32xf32>
    %c0_38 = arith.constant 0 : index
    %c0_39 = arith.constant 0 : index
    %116 = vector.load %arg18[%c0_38, %c0_39] : memref<1x32xf32, #tpu.memory_space<vmem>>, vector<1x32xf32>
    %117 = vector.broadcast %116 : vector<1x32xf32> to vector<16x32xf32>
    %118 = arith.mulf %115, %117 : vector<16x32xf32>
    %c0_40 = arith.constant 0 : index
    %c0_41 = arith.constant 0 : index
    %119 = vector.load %arg17[%c0_40, %c0_41] : memref<1x32xf32, #tpu.memory_space<vmem>>, vector<1x32xf32>
    %120 = vector.broadcast %119 : vector<1x32xf32> to vector<16x32xf32>
    %121 = arith.addf %118, %120 : vector<16x32xf32>
    %122 = arith.truncf %121 : vector<16x32xf32> to vector<16x32xbf16>
    %c0_42 = arith.constant 0 : index
    %c0_43 = arith.constant 0 : index
    %123 = vector.load %arg21[%c0_42, %c0_43] : memref<32x64xbf16, #tpu.memory_space<vmem>>, vector<32x64xbf16>
    %cst_44 = arith.constant dense<0.000000e+00> : vector<16x64xf32>
    %124 = tpu.matmul %122, %123, %cst_44 {dimension_numbers = #tpu.dot_dimension_numbers<[1], [0], [0], [1], [0, 0, 1, 1], [], []>} : vector<16x32xbf16>, vector<32x64xbf16>, vector<16x64xf32> -> vector<16x64xf32>
    %c0_45 = arith.constant 0 : index
    %c0_46 = arith.constant 0 : index
    %125 = vector.load %arg13[%c0_45, %c0_46] : memref<1x64xf32, #tpu.memory_space<vmem>>, vector<1x64xf32>
    %126 = vector.broadcast %125 : vector<1x64xf32> to vector<16x64xf32>
    %127 = arith.addf %124, %126 : vector<16x64xf32>
    %128 = arith.mulf %127, %127 : vector<16x64xf32>
    %129 = arith.mulf %127, %128 : vector<16x64xf32>
    %cst_47 = arith.constant 4.471500e-02 : f32
    %130 = vector.broadcast %cst_47 : f32 to vector<16x64xf32>
    %131 = arith.mulf %130, %129 : vector<16x64xf32>
    %132 = arith.addf %127, %131 : vector<16x64xf32>
    %cst_48 = arith.constant 0.797884583 : f32
    %133 = vector.broadcast %cst_48 : f32 to vector<16x64xf32>
    %134 = arith.mulf %133, %132 : vector<16x64xf32>
    %135 = math.tanh %134 : vector<16x64xf32>
    %cst_49 = arith.constant 1.000000e+00 : f32
    %136 = vector.broadcast %cst_49 : f32 to vector<16x64xf32>
    %137 = arith.addf %136, %135 : vector<16x64xf32>
    %cst_50 = arith.constant 5.000000e-01 : f32
    %138 = vector.broadcast %cst_50 : f32 to vector<16x64xf32>
    %139 = arith.mulf %138, %137 : vector<16x64xf32>
    %140 = arith.mulf %127, %139 : vector<16x64xf32>
    %141 = arith.truncf %140 : vector<16x64xf32> to vector<16x64xbf16>
    %c0_51 = arith.constant 0 : index
    %c0_52 = arith.constant 0 : index
    %142 = vector.load %arg22[%c0_51, %c0_52] : memref<64x32xbf16, #tpu.memory_space<vmem>>, vector<64x32xbf16>
    %cst_53 = arith.constant dense<0.000000e+00> : vector<16x32xf32>
    %143 = tpu.matmul %141, %142, %cst_53 {dimension_numbers = #tpu.dot_dimension_numbers<[1], [0], [0], [1], [0, 0, 1, 1], [], []>} : vector<16x64xbf16>, vector<64x32xbf16>, vector<16x32xf32> -> vector<16x32xf32>
    %c0_54 = arith.constant 0 : index
    %c0_55 = arith.constant 0 : index
    %144 = vector.load %arg14[%c0_54, %c0_55] : memref<1x32xf32, #tpu.memory_space<vmem>>, vector<1x32xf32>
    %145 = vector.broadcast %144 : vector<1x32xf32> to vector<16x32xf32>
    %146 = arith.addf %143, %145 : vector<16x32xf32>
    %147 = arith.addf %121, %146 : vector<16x32xf32>
    %cst_56 = arith.constant dense<0.000000e+00> : vector<16xf32>
    %148 = vector.multi_reduction <add>, %147, %cst_56 [1] : vector<16x32xf32> to vector<16xf32>
    %149 = vector.shape_cast %148 : vector<16xf32> to vector<16x1xf32>
    %cst_57 = arith.constant 3.200000e+01 : f32
    %150 = vector.broadcast %cst_57 : f32 to vector<16x1xf32>
    %151 = arith.divf %149, %150 : vector<16x1xf32>
    %152 = vector.broadcast %151 : vector<16x1xf32> to vector<16x32xf32>
    %153 = arith.subf %147, %152 : vector<16x32xf32>
    %154 = arith.mulf %153, %153 : vector<16x32xf32>
    %cst_58 = arith.constant dense<0.000000e+00> : vector<16xf32>
    %155 = vector.multi_reduction <add>, %154, %cst_58 [1] : vector<16x32xf32> to vector<16xf32>
    %156 = vector.shape_cast %155 : vector<16xf32> to vector<16x1xf32>
    %cst_59 = arith.constant 3.200000e+01 : f32
    %157 = vector.broadcast %cst_59 : f32 to vector<16x1xf32>
    %158 = arith.divf %156, %157 : vector<16x1xf32>
    %159 = vector.broadcast %151 : vector<16x1xf32> to vector<16x32xf32>
    %160 = arith.subf %147, %159 : vector<16x32xf32>
    %cst_60 = arith.constant 9.99999996E-13 : f32
    %161 = vector.broadcast %cst_60 : f32 to vector<16x1xf32>
    %162 = arith.addf %158, %161 : vector<16x1xf32>
    %163 = math.rsqrt %162 : vector<16x1xf32>
    %164 = vector.broadcast %163 : vector<16x1xf32> to vector<16x32xf32>
    %165 = arith.mulf %160, %164 : vector<16x32xf32>
    %c0_61 = arith.constant 0 : index
    %c0_62 = arith.constant 0 : index
    %166 = vector.load %arg20[%c0_61, %c0_62] : memref<1x32xf32, #tpu.memory_space<vmem>>, vector<1x32xf32>
    %167 = vector.broadcast %166 : vector<1x32xf32> to vector<16x32xf32>
    %168 = arith.mulf %165, %167 : vector<16x32xf32>
    %c0_63 = arith.constant 0 : index
    %c0_64 = arith.constant 0 : index
    %169 = vector.load %arg19[%c0_63, %c0_64] : memref<1x32xf32, #tpu.memory_space<vmem>>, vector<1x32xf32>
    %170 = vector.broadcast %169 : vector<1x32xf32> to vector<16x32xf32>
    %171 = arith.addf %168, %170 : vector<16x32xf32>
    %172 = arith.truncf %171 : vector<16x32xf32> to vector<16x32xbf16>
    %c0_65 = arith.constant 0 : index
    %c0_66 = arith.constant 0 : index
    %173 = vector.load %arg36[%c0_65, %c0_66] : memref<32x96xbf16, #tpu.memory_space<vmem>>, vector<32x96xbf16>
    %cst_67 = arith.constant dense<0.000000e+00> : vector<16x96xf32>
    %174 = tpu.matmul %172, %173, %cst_67 {dimension_numbers = #tpu.dot_dimension_numbers<[1], [0], [0], [1], [0, 0, 1, 1], [], []>} : vector<16x32xbf16>, vector<32x96xbf16>, vector<16x96xf32> -> vector<16x96xf32>
    %c0_68 = arith.constant 0 : index
    %c0_69 = arith.constant 0 : index
    %175 = vector.load %arg28[%c0_68, %c0_69] : memref<1x96xf32, #tpu.memory_space<vmem>>, vector<1x96xf32>
    %176 = vector.broadcast %175 : vector<1x96xf32> to vector<16x96xf32>
    %177 = arith.addf %174, %176 : vector<16x96xf32>
    %c0_70 = arith.constant 0 : index
    %c0_71 = arith.constant 0 : index
    %178 = vector.load %arg35[%c0_70, %c0_71] : memref<32x32xbf16, #tpu.memory_space<vmem>>, vector<32x32xbf16>
    %c0_72 = arith.constant 0 : index
    %c0_73 = arith.constant 0 : index
    %179 = vector.load %arg27[%c0_72, %c0_73] : memref<1x32xf32, #tpu.memory_space<vmem>>, vector<1x32xf32>
    %180 = vector.extract_strided_slice %177 {offsets = [0, 0], sizes = [16, 16], strides = [1, 1]} : vector<16x96xf32> to vector<16x16xf32>
    %181 = vector.shape_cast %180 : vector<16x16xf32> to vector<2x8x16xf32>
    %182 = vector.extract_strided_slice %177 {offsets = [0, 32], sizes = [16, 16], strides = [1, 1]} : vector<16x96xf32> to vector<16x16xf32>
    %183 = vector.shape_cast %182 : vector<16x16xf32> to vector<2x8x16xf32>
    %184 = vector.extract_strided_slice %177 {offsets = [0, 64], sizes = [16, 16], strides = [1, 1]} : vector<16x96xf32> to vector<16x16xf32>
    %185 = vector.shape_cast %184 : vector<16x16xf32> to vector<2x8x16xf32>
    %186 = arith.truncf %181 : vector<2x8x16xf32> to vector<2x8x16xbf16>
    %187 = arith.truncf %183 : vector<2x8x16xf32> to vector<2x8x16xbf16>
    "tpu.trace_start"() <{level = 10 : i32, message = "bqd,bkd->bqk"}> : () -> ()
    %cst_74 = arith.constant dense<0.000000e+00> : vector<2x8x8xf32>
    %188 = tpu.matmul %186, %187, %cst_74 {dimension_numbers = #tpu.dot_dimension_numbers<[2], [2], [1], [1], [0, 0, 0, 1, 1, 1], [0], [0]>} : vector<2x8x16xbf16>, vector<2x8x16xbf16>, vector<2x8x8xf32> -> vector<2x8x8xf32>
    "tpu.trace_stop"() : () -> ()
    %cst_75 = arith.constant 2.500000e-01 : f32
    %189 = vector.broadcast %cst_75 : f32 to vector<2x8x8xf32>
    %190 = arith.mulf %188, %189 : vector<2x8x8xf32>
    %191 = vector.broadcast %25 : vector<2x1x8xf32> to vector<2x8x8xf32>
    %192 = arith.addf %190, %191 : vector<2x8x8xf32>
    %cst_76 = arith.constant dense<0xFF800000> : vector<2x8xf32>
    %193 = vector.multi_reduction <maximumf>, %192, %cst_76 [2] : vector<2x8x8xf32> to vector<2x8xf32>
    %194 = vector.shape_cast %193 : vector<2x8xf32> to vector<2x8x1xf32>
    %195 = vector.broadcast %194 : vector<2x8x1xf32> to vector<2x8x8xf32>
    %196 = arith.subf %192, %195 : vector<2x8x8xf32>
    %197 = math.exp %196 : vector<2x8x8xf32>
    %cst_77 = arith.constant dense<0.000000e+00> : vector<2x8xf32>
    %198 = vector.multi_reduction <add>, %197, %cst_77 [2] : vector<2x8x8xf32> to vector<2x8xf32>
    %199 = vector.shape_cast %198 : vector<2x8xf32> to vector<2x8x1xf32>
    %200 = tpu.reciprocal %199 {approx = true} : vector<2x8x1xf32> -> vector<2x8x1xf32>
    %201 = vector.broadcast %200 : vector<2x8x1xf32> to vector<2x8x8xf32>
    %202 = arith.mulf %197, %201 : vector<2x8x8xf32>
    %203 = arith.truncf %202 : vector<2x8x8xf32> to vector<2x8x8xbf16>
    %204 = arith.truncf %185 : vector<2x8x16xf32> to vector<2x8x16xbf16>
    "tpu.trace_start"() <{level = 10 : i32, message = "bqk,bkd->bqd"}> : () -> ()
    %cst_78 = arith.constant dense<0.000000e+00> : vector<2x8x16xf32>
    %205 = tpu.matmul %203, %204, %cst_78 {dimension_numbers = #tpu.dot_dimension_numbers<[2], [1], [1], [2], [0, 0, 0, 1, 1, 2], [0], [0]>} : vector<2x8x8xbf16>, vector<2x8x16xbf16>, vector<2x8x16xf32> -> vector<2x8x16xf32>
    "tpu.trace_stop"() : () -> ()
    %206 = vector.shape_cast %205 : vector<2x8x16xf32> to vector<16x16xf32>
    %207 = arith.truncf %206 : vector<16x16xf32> to vector<16x16xbf16>
    %208 = vector.extract_strided_slice %178 {offsets = [0, 0], sizes = [16, 32], strides = [1, 1]} : vector<32x32xbf16> to vector<16x32xbf16>
    %cst_79 = arith.constant dense<0.000000e+00> : vector<16x32xf32>
    %209 = tpu.matmul %207, %208, %cst_79 {dimension_numbers = #tpu.dot_dimension_numbers<[1], [0], [0], [1], [0, 0, 1, 1], [], []>} : vector<16x16xbf16>, vector<16x32xbf16>, vector<16x32xf32> -> vector<16x32xf32>
    %210 = vector.broadcast %179 : vector<1x32xf32> to vector<16x32xf32>
    %211 = arith.addf %210, %209 : vector<16x32xf32>
    %212 = vector.extract_strided_slice %177 {offsets = [0, 16], sizes = [16, 16], strides = [1, 1]} : vector<16x96xf32> to vector<16x16xf32>
    %213 = vector.shape_cast %212 : vector<16x16xf32> to vector<2x8x16xf32>
    %214 = vector.extract_strided_slice %177 {offsets = [0, 48], sizes = [16, 16], strides = [1, 1]} : vector<16x96xf32> to vector<16x16xf32>
    %215 = vector.shape_cast %214 : vector<16x16xf32> to vector<2x8x16xf32>
    %216 = vector.extract_strided_slice %177 {offsets = [0, 80], sizes = [16, 16], strides = [1, 1]} : vector<16x96xf32> to vector<16x16xf32>
    %217 = vector.shape_cast %216 : vector<16x16xf32> to vector<2x8x16xf32>
    %218 = arith.truncf %213 : vector<2x8x16xf32> to vector<2x8x16xbf16>
    %219 = arith.truncf %215 : vector<2x8x16xf32> to vector<2x8x16xbf16>
    "tpu.trace_start"() <{level = 10 : i32, message = "bqd,bkd->bqk"}> : () -> ()
    %cst_80 = arith.constant dense<0.000000e+00> : vector<2x8x8xf32>
    %220 = tpu.matmul %218, %219, %cst_80 {dimension_numbers = #tpu.dot_dimension_numbers<[2], [2], [1], [1], [0, 0, 0, 1, 1, 1], [0], [0]>} : vector<2x8x16xbf16>, vector<2x8x16xbf16>, vector<2x8x8xf32> -> vector<2x8x8xf32>
    "tpu.trace_stop"() : () -> ()
    %cst_81 = arith.constant 2.500000e-01 : f32
    %221 = vector.broadcast %cst_81 : f32 to vector<2x8x8xf32>
    %222 = arith.mulf %220, %221 : vector<2x8x8xf32>
    %223 = vector.broadcast %25 : vector<2x1x8xf32> to vector<2x8x8xf32>
    %224 = arith.addf %222, %223 : vector<2x8x8xf32>
    %cst_82 = arith.constant dense<0xFF800000> : vector<2x8xf32>
    %225 = vector.multi_reduction <maximumf>, %224, %cst_82 [2] : vector<2x8x8xf32> to vector<2x8xf32>
    %226 = vector.shape_cast %225 : vector<2x8xf32> to vector<2x8x1xf32>
    %227 = vector.broadcast %226 : vector<2x8x1xf32> to vector<2x8x8xf32>
    %228 = arith.subf %224, %227 : vector<2x8x8xf32>
    %229 = math.exp %228 : vector<2x8x8xf32>
    %cst_83 = arith.constant dense<0.000000e+00> : vector<2x8xf32>
    %230 = vector.multi_reduction <add>, %229, %cst_83 [2] : vector<2x8x8xf32> to vector<2x8xf32>
    %231 = vector.shape_cast %230 : vector<2x8xf32> to vector<2x8x1xf32>
    %232 = tpu.reciprocal %231 {approx = true} : vector<2x8x1xf32> -> vector<2x8x1xf32>
    %233 = vector.broadcast %232 : vector<2x8x1xf32> to vector<2x8x8xf32>
    %234 = arith.mulf %229, %233 : vector<2x8x8xf32>
    %235 = arith.truncf %234 : vector<2x8x8xf32> to vector<2x8x8xbf16>
    %236 = arith.truncf %217 : vector<2x8x16xf32> to vector<2x8x16xbf16>
    "tpu.trace_start"() <{level = 10 : i32, message = "bqk,bkd->bqd"}> : () -> ()
    %cst_84 = arith.constant dense<0.000000e+00> : vector<2x8x16xf32>
    %237 = tpu.matmul %235, %236, %cst_84 {dimension_numbers = #tpu.dot_dimension_numbers<[2], [1], [1], [2], [0, 0, 0, 1, 1, 2], [0], [0]>} : vector<2x8x8xbf16>, vector<2x8x16xbf16>, vector<2x8x16xf32> -> vector<2x8x16xf32>
    "tpu.trace_stop"() : () -> ()
    %238 = vector.shape_cast %237 : vector<2x8x16xf32> to vector<16x16xf32>
    %239 = arith.truncf %238 : vector<16x16xf32> to vector<16x16xbf16>
    %240 = vector.extract_strided_slice %178 {offsets = [16, 0], sizes = [16, 32], strides = [1, 1]} : vector<32x32xbf16> to vector<16x32xbf16>
    %cst_85 = arith.constant dense<0.000000e+00> : vector<16x32xf32>
    %241 = tpu.matmul %239, %240, %cst_85 {dimension_numbers = #tpu.dot_dimension_numbers<[1], [0], [0], [1], [0, 0, 1, 1], [], []>} : vector<16x16xbf16>, vector<16x32xbf16>, vector<16x32xf32> -> vector<16x32xf32>
    %242 = arith.addf %211, %241 : vector<16x32xf32>
    %243 = arith.addf %171, %242 : vector<16x32xf32>
    %cst_86 = arith.constant dense<0.000000e+00> : vector<16xf32>
    %244 = vector.multi_reduction <add>, %243, %cst_86 [1] : vector<16x32xf32> to vector<16xf32>
    %245 = vector.shape_cast %244 : vector<16xf32> to vector<16x1xf32>
    %cst_87 = arith.constant 3.200000e+01 : f32
    %246 = vector.broadcast %cst_87 : f32 to vector<16x1xf32>
    %247 = arith.divf %245, %246 : vector<16x1xf32>
    %248 = vector.broadcast %247 : vector<16x1xf32> to vector<16x32xf32>
    %249 = arith.subf %243, %248 : vector<16x32xf32>
    %250 = arith.mulf %249, %249 : vector<16x32xf32>
    %cst_88 = arith.constant dense<0.000000e+00> : vector<16xf32>
    %251 = vector.multi_reduction <add>, %250, %cst_88 [1] : vector<16x32xf32> to vector<16xf32>
    %252 = vector.shape_cast %251 : vector<16xf32> to vector<16x1xf32>
    %cst_89 = arith.constant 3.200000e+01 : f32
    %253 = vector.broadcast %cst_89 : f32 to vector<16x1xf32>
    %254 = arith.divf %252, %253 : vector<16x1xf32>
    %255 = vector.broadcast %247 : vector<16x1xf32> to vector<16x32xf32>
    %256 = arith.subf %243, %255 : vector<16x32xf32>
    %cst_90 = arith.constant 9.99999996E-13 : f32
    %257 = vector.broadcast %cst_90 : f32 to vector<16x1xf32>
    %258 = arith.addf %254, %257 : vector<16x1xf32>
    %259 = math.rsqrt %258 : vector<16x1xf32>
    %260 = vector.broadcast %259 : vector<16x1xf32> to vector<16x32xf32>
    %261 = arith.mulf %256, %260 : vector<16x32xf32>
    %c0_91 = arith.constant 0 : index
    %c0_92 = arith.constant 0 : index
    %262 = vector.load %arg30[%c0_91, %c0_92] : memref<1x32xf32, #tpu.memory_space<vmem>>, vector<1x32xf32>
    %263 = vector.broadcast %262 : vector<1x32xf32> to vector<16x32xf32>
    %264 = arith.mulf %261, %263 : vector<16x32xf32>
    %c0_93 = arith.constant 0 : index
    %c0_94 = arith.constant 0 : index
    %265 = vector.load %arg29[%c0_93, %c0_94] : memref<1x32xf32, #tpu.memory_space<vmem>>, vector<1x32xf32>
    %266 = vector.broadcast %265 : vector<1x32xf32> to vector<16x32xf32>
    %267 = arith.addf %264, %266 : vector<16x32xf32>
    %268 = arith.truncf %267 : vector<16x32xf32> to vector<16x32xbf16>
    %c0_95 = arith.constant 0 : index
    %c0_96 = arith.constant 0 : index
    %269 = vector.load %arg33[%c0_95, %c0_96] : memref<32x64xbf16, #tpu.memory_space<vmem>>, vector<32x64xbf16>
    %cst_97 = arith.constant dense<0.000000e+00> : vector<16x64xf32>
    %270 = tpu.matmul %268, %269, %cst_97 {dimension_numbers = #tpu.dot_dimension_numbers<[1], [0], [0], [1], [0, 0, 1, 1], [], []>} : vector<16x32xbf16>, vector<32x64xbf16>, vector<16x64xf32> -> vector<16x64xf32>
    %c0_98 = arith.constant 0 : index
    %c0_99 = arith.constant 0 : index
    %271 = vector.load %arg25[%c0_98, %c0_99] : memref<1x64xf32, #tpu.memory_space<vmem>>, vector<1x64xf32>
    %272 = vector.broadcast %271 : vector<1x64xf32> to vector<16x64xf32>
    %273 = arith.addf %270, %272 : vector<16x64xf32>
    %274 = arith.mulf %273, %273 : vector<16x64xf32>
    %275 = arith.mulf %273, %274 : vector<16x64xf32>
    %cst_100 = arith.constant 4.471500e-02 : f32
    %276 = vector.broadcast %cst_100 : f32 to vector<16x64xf32>
    %277 = arith.mulf %276, %275 : vector<16x64xf32>
    %278 = arith.addf %273, %277 : vector<16x64xf32>
    %cst_101 = arith.constant 0.797884583 : f32
    %279 = vector.broadcast %cst_101 : f32 to vector<16x64xf32>
    %280 = arith.mulf %279, %278 : vector<16x64xf32>
    %281 = math.tanh %280 : vector<16x64xf32>
    %cst_102 = arith.constant 1.000000e+00 : f32
    %282 = vector.broadcast %cst_102 : f32 to vector<16x64xf32>
    %283 = arith.addf %282, %281 : vector<16x64xf32>
    %cst_103 = arith.constant 5.000000e-01 : f32
    %284 = vector.broadcast %cst_103 : f32 to vector<16x64xf32>
    %285 = arith.mulf %284, %283 : vector<16x64xf32>
    %286 = arith.mulf %273, %285 : vector<16x64xf32>
    %287 = arith.truncf %286 : vector<16x64xf32> to vector<16x64xbf16>
    %c0_104 = arith.constant 0 : index
    %c0_105 = arith.constant 0 : index
    %288 = vector.load %arg34[%c0_104, %c0_105] : memref<64x32xbf16, #tpu.memory_space<vmem>>, vector<64x32xbf16>
    %cst_106 = arith.constant dense<0.000000e+00> : vector<16x32xf32>
    %289 = tpu.matmul %287, %288, %cst_106 {dimension_numbers = #tpu.dot_dimension_numbers<[1], [0], [0], [1], [0, 0, 1, 1], [], []>} : vector<16x64xbf16>, vector<64x32xbf16>, vector<16x32xf32> -> vector<16x32xf32>
    %c0_107 = arith.constant 0 : index
    %c0_108 = arith.constant 0 : index
    %290 = vector.load %arg26[%c0_107, %c0_108] : memref<1x32xf32, #tpu.memory_space<vmem>>, vector<1x32xf32>
    %291 = vector.broadcast %290 : vector<1x32xf32> to vector<16x32xf32>
    %292 = arith.addf %289, %291 : vector<16x32xf32>
    %293 = arith.addf %267, %292 : vector<16x32xf32>
    %cst_109 = arith.constant dense<0.000000e+00> : vector<16xf32>
    %294 = vector.multi_reduction <add>, %293, %cst_109 [1] : vector<16x32xf32> to vector<16xf32>
    %295 = vector.shape_cast %294 : vector<16xf32> to vector<16x1xf32>
    %cst_110 = arith.constant 3.200000e+01 : f32
    %296 = vector.broadcast %cst_110 : f32 to vector<16x1xf32>
    %297 = arith.divf %295, %296 : vector<16x1xf32>
    %298 = vector.broadcast %297 : vector<16x1xf32> to vector<16x32xf32>
    %299 = arith.subf %293, %298 : vector<16x32xf32>
    %300 = arith.mulf %299, %299 : vector<16x32xf32>
    %cst_111 = arith.constant dense<0.000000e+00> : vector<16xf32>
    %301 = vector.multi_reduction <add>, %300, %cst_111 [1] : vector<16x32xf32> to vector<16xf32>
    %302 = vector.shape_cast %301 : vector<16xf32> to vector<16x1xf32>
    %cst_112 = arith.constant 3.200000e+01 : f32
    %303 = vector.broadcast %cst_112 : f32 to vector<16x1xf32>
    %304 = arith.divf %302, %303 : vector<16x1xf32>
    %305 = vector.broadcast %297 : vector<16x1xf32> to vector<16x32xf32>
    %306 = arith.subf %293, %305 : vector<16x32xf32>
    %cst_113 = arith.constant 9.99999996E-13 : f32
    %307 = vector.broadcast %cst_113 : f32 to vector<16x1xf32>
    %308 = arith.addf %304, %307 : vector<16x1xf32>
    %309 = math.rsqrt %308 : vector<16x1xf32>
    %310 = vector.broadcast %309 : vector<16x1xf32> to vector<16x32xf32>
    %311 = arith.mulf %306, %310 : vector<16x32xf32>
    %c0_114 = arith.constant 0 : index
    %c0_115 = arith.constant 0 : index
    %312 = vector.load %arg32[%c0_114, %c0_115] : memref<1x32xf32, #tpu.memory_space<vmem>>, vector<1x32xf32>
    %313 = vector.broadcast %312 : vector<1x32xf32> to vector<16x32xf32>
    %314 = arith.mulf %311, %313 : vector<16x32xf32>
    %c0_116 = arith.constant 0 : index
    %c0_117 = arith.constant 0 : index
    %315 = vector.load %arg31[%c0_116, %c0_117] : memref<1x32xf32, #tpu.memory_space<vmem>>, vector<1x32xf32>
    %316 = vector.broadcast %315 : vector<1x32xf32> to vector<16x32xf32>
    %317 = arith.addf %314, %316 : vector<16x32xf32>
    %318 = arith.truncf %317 : vector<16x32xf32> to vector<16x32xbf16>
    %c0_118 = arith.constant 0 : index
    %c0_119 = arith.constant 0 : index
    %319 = vector.load %arg4[%c0_118, %c0_119] : memref<48x3xbf16, #tpu.memory_space<vmem>>, vector<48x3xbf16>
    %cst_120 = arith.constant 0.000000e+00 : f32
    %320 = vector.broadcast %cst_120 : f32 to vector<2x3xf32>
    %c0_121 = arith.constant 0 : index
    %c0_122 = arith.constant 0 : index
    %321 = vector.load %arg3[%c0_121, %c0_122] : memref<1x3xf32, #tpu.memory_space<vmem>>, vector<1x3xf32>
    %322 = vector.broadcast %321 : vector<1x3xf32> to vector<2x3xf32>
    %323 = arith.addf %320, %322 : vector<2x3xf32>
    %cst_123 = arith.constant 0.000000e+00 : f32
    %324 = vector.broadcast %cst_123 : f32 to vector<2x7x16xf32>
    %c0_124 = arith.constant 0 : index
    %c0_125 = arith.constant 0 : index
    %c0_126 = arith.constant 0 : index
    %325 = vector.load %arg6[%c0_124, %c0_125, %c0_126] : memref<2x32x16xbf16, #tpu.memory_space<vmem>>, vector<1x32x16xbf16>
    %326 = vector.shape_cast %325 : vector<1x32x16xbf16> to vector<32x16xbf16>
    %cst_127 = arith.constant dense<0.000000e+00> : vector<16x16xf32>
    %327 = tpu.matmul %318, %326, %cst_127 {dimension_numbers = #tpu.dot_dimension_numbers<[1], [0], [0], [1], [0, 0, 1, 1], [], []>} : vector<16x32xbf16>, vector<32x16xbf16>, vector<16x16xf32> -> vector<16x16xf32>
    %328 = vector.shape_cast %327 : vector<16x16xf32> to vector<2x8x16xf32>
    %329 = vector.extract_strided_slice %328 {offsets = [0, 0, 0], sizes = [2, 7, 16], strides = [1, 1, 1]} : vector<2x8x16xf32> to vector<2x7x16xf32>
    %330 = arith.addf %324, %329 : vector<2x7x16xf32>
    %c1 = arith.constant 1 : index
    %c0_128 = arith.constant 0 : index
    %c0_129 = arith.constant 0 : index
    %331 = vector.load %arg6[%c1, %c0_128, %c0_129] : memref<2x32x16xbf16, #tpu.memory_space<vmem>>, vector<1x32x16xbf16>
    %332 = vector.shape_cast %331 : vector<1x32x16xbf16> to vector<32x16xbf16>
    %cst_130 = arith.constant dense<0.000000e+00> : vector<16x16xf32>
    %333 = tpu.matmul %318, %332, %cst_130 {dimension_numbers = #tpu.dot_dimension_numbers<[1], [0], [0], [1], [0, 0, 1, 1], [], []>} : vector<16x32xbf16>, vector<32x16xbf16>, vector<16x16xf32> -> vector<16x16xf32>
    %334 = vector.shape_cast %333 : vector<16x16xf32> to vector<2x8x16xf32>
    %335 = vector.extract_strided_slice %334 {offsets = [0, 1, 0], sizes = [2, 7, 16], strides = [1, 1, 1]} : vector<2x8x16xf32> to vector<2x7x16xf32>
    %336 = arith.addf %330, %335 : vector<2x7x16xf32>
    %c0_131 = arith.constant 0 : index
    %c0_132 = arith.constant 0 : index
    %337 = vector.load %arg5[%c0_131, %c0_132] : memref<1x16xf32, #tpu.memory_space<vmem>>, vector<1x16xf32>
    %338 = vector.shape_cast %337 : vector<1x16xf32> to vector<1x1x16xf32>
    %339 = vector.broadcast %338 : vector<1x1x16xf32> to vector<2x7x16xf32>
    %340 = arith.addf %336, %339 : vector<2x7x16xf32>
    %cst_133 = arith.constant 0.000000e+00 : f32
    %341 = vector.broadcast %cst_133 : f32 to vector<2x7x16xf32>
    %342 = arith.maximumf %340, %341 : vector<2x7x16xf32>
    %cst_134 = arith.constant dense<0xFF800000> : vector<2x16xf32>
    %343 = vector.multi_reduction <maximumf>, %342, %cst_134 [1] : vector<2x7x16xf32> to vector<2x16xf32>
    %344 = arith.truncf %343 : vector<2x16xf32> to vector<2x16xbf16>
    %345 = vector.extract_strided_slice %319 {offsets = [0, 0], sizes = [16, 3], strides = [1, 1]} : vector<48x3xbf16> to vector<16x3xbf16>
    %cst_135 = arith.constant dense<0.000000e+00> : vector<2x3xf32>
    %346 = tpu.matmul %344, %345, %cst_135 {dimension_numbers = #tpu.dot_dimension_numbers<[1], [0], [0], [1], [0, 0, 1, 1], [], []>} : vector<2x16xbf16>, vector<16x3xbf16>, vector<2x3xf32> -> vector<2x3xf32>
    %347 = arith.addf %323, %346 : vector<2x3xf32>
    %cst_136 = arith.constant 0.000000e+00 : f32
    %348 = vector.broadcast %cst_136 : f32 to vector<2x6x16xf32>
    %c0_137 = arith.constant 0 : index
    %c0_138 = arith.constant 0 : index
    %c0_139 = arith.constant 0 : index
    %349 = vector.load %arg8[%c0_137, %c0_138, %c0_139] : memref<3x32x16xbf16, #tpu.memory_space<vmem>>, vector<1x32x16xbf16>
    %350 = vector.shape_cast %349 : vector<1x32x16xbf16> to vector<32x16xbf16>
    %cst_140 = arith.constant dense<0.000000e+00> : vector<16x16xf32>
    %351 = tpu.matmul %318, %350, %cst_140 {dimension_numbers = #tpu.dot_dimension_numbers<[1], [0], [0], [1], [0, 0, 1, 1], [], []>} : vector<16x32xbf16>, vector<32x16xbf16>, vector<16x16xf32> -> vector<16x16xf32>
    %352 = vector.shape_cast %351 : vector<16x16xf32> to vector<2x8x16xf32>
    %353 = vector.extract_strided_slice %352 {offsets = [0, 0, 0], sizes = [2, 6, 16], strides = [1, 1, 1]} : vector<2x8x16xf32> to vector<2x6x16xf32>
    %354 = arith.addf %348, %353 : vector<2x6x16xf32>
    %c1_141 = arith.constant 1 : index
    %c0_142 = arith.constant 0 : index
    %c0_143 = arith.constant 0 : index
    %355 = vector.load %arg8[%c1_141, %c0_142, %c0_143] : memref<3x32x16xbf16, #tpu.memory_space<vmem>>, vector<1x32x16xbf16>
    %356 = vector.shape_cast %355 : vector<1x32x16xbf16> to vector<32x16xbf16>
    %cst_144 = arith.constant dense<0.000000e+00> : vector<16x16xf32>
    %357 = tpu.matmul %318, %356, %cst_144 {dimension_numbers = #tpu.dot_dimension_numbers<[1], [0], [0], [1], [0, 0, 1, 1], [], []>} : vector<16x32xbf16>, vector<32x16xbf16>, vector<16x16xf32> -> vector<16x16xf32>
    %358 = vector.shape_cast %357 : vector<16x16xf32> to vector<2x8x16xf32>
    %359 = vector.extract_strided_slice %358 {offsets = [0, 1, 0], sizes = [2, 6, 16], strides = [1, 1, 1]} : vector<2x8x16xf32> to vector<2x6x16xf32>
    %360 = arith.addf %354, %359 : vector<2x6x16xf32>
    %c2 = arith.constant 2 : index
    %c0_145 = arith.constant 0 : index
    %c0_146 = arith.constant 0 : index
    %361 = vector.load %arg8[%c2, %c0_145, %c0_146] : memref<3x32x16xbf16, #tpu.memory_space<vmem>>, vector<1x32x16xbf16>
    %362 = vector.shape_cast %361 : vector<1x32x16xbf16> to vector<32x16xbf16>
    %cst_147 = arith.constant dense<0.000000e+00> : vector<16x16xf32>
    %363 = tpu.matmul %318, %362, %cst_147 {dimension_numbers = #tpu.dot_dimension_numbers<[1], [0], [0], [1], [0, 0, 1, 1], [], []>} : vector<16x32xbf16>, vector<32x16xbf16>, vector<16x16xf32> -> vector<16x16xf32>
    %364 = vector.shape_cast %363 : vector<16x16xf32> to vector<2x8x16xf32>
    %365 = vector.extract_strided_slice %364 {offsets = [0, 2, 0], sizes = [2, 6, 16], strides = [1, 1, 1]} : vector<2x8x16xf32> to vector<2x6x16xf32>
    %366 = arith.addf %360, %365 : vector<2x6x16xf32>
    %c0_148 = arith.constant 0 : index
    %c0_149 = arith.constant 0 : index
    %367 = vector.load %arg7[%c0_148, %c0_149] : memref<1x16xf32, #tpu.memory_space<vmem>>, vector<1x16xf32>
    %368 = vector.shape_cast %367 : vector<1x16xf32> to vector<1x1x16xf32>
    %369 = vector.broadcast %368 : vector<1x1x16xf32> to vector<2x6x16xf32>
    %370 = arith.addf %366, %369 : vector<2x6x16xf32>
    %cst_150 = arith.constant 0.000000e+00 : f32
    %371 = vector.broadcast %cst_150 : f32 to vector<2x6x16xf32>
    %372 = arith.maximumf %370, %371 : vector<2x6x16xf32>
    %cst_151 = arith.constant dense<0xFF800000> : vector<2x16xf32>
    %373 = vector.multi_reduction <maximumf>, %372, %cst_151 [1] : vector<2x6x16xf32> to vector<2x16xf32>
    %374 = arith.truncf %373 : vector<2x16xf32> to vector<2x16xbf16>
    %375 = vector.extract_strided_slice %319 {offsets = [16, 0], sizes = [16, 3], strides = [1, 1]} : vector<48x3xbf16> to vector<16x3xbf16>
    %cst_152 = arith.constant dense<0.000000e+00> : vector<2x3xf32>
    %376 = tpu.matmul %374, %375, %cst_152 {dimension_numbers = #tpu.dot_dimension_numbers<[1], [0], [0], [1], [0, 0, 1, 1], [], []>} : vector<2x16xbf16>, vector<16x3xbf16>, vector<2x3xf32> -> vector<2x3xf32>
    %377 = arith.addf %347, %376 : vector<2x3xf32>
    %cst_153 = arith.constant 0.000000e+00 : f32
    %378 = vector.broadcast %cst_153 : f32 to vector<2x5x16xf32>
    %c0_154 = arith.constant 0 : index
    %c0_155 = arith.constant 0 : index
    %c0_156 = arith.constant 0 : index
    %379 = vector.load %arg10[%c0_154, %c0_155, %c0_156] : memref<4x32x16xbf16, #tpu.memory_space<vmem>>, vector<1x32x16xbf16>
    %380 = vector.shape_cast %379 : vector<1x32x16xbf16> to vector<32x16xbf16>
    %cst_157 = arith.constant dense<0.000000e+00> : vector<16x16xf32>
    %381 = tpu.matmul %318, %380, %cst_157 {dimension_numbers = #tpu.dot_dimension_numbers<[1], [0], [0], [1], [0, 0, 1, 1], [], []>} : vector<16x32xbf16>, vector<32x16xbf16>, vector<16x16xf32> -> vector<16x16xf32>
    %382 = vector.shape_cast %381 : vector<16x16xf32> to vector<2x8x16xf32>
    %383 = vector.extract_strided_slice %382 {offsets = [0, 0, 0], sizes = [2, 5, 16], strides = [1, 1, 1]} : vector<2x8x16xf32> to vector<2x5x16xf32>
    %384 = arith.addf %378, %383 : vector<2x5x16xf32>
    %c1_158 = arith.constant 1 : index
    %c0_159 = arith.constant 0 : index
    %c0_160 = arith.constant 0 : index
    %385 = vector.load %arg10[%c1_158, %c0_159, %c0_160] : memref<4x32x16xbf16, #tpu.memory_space<vmem>>, vector<1x32x16xbf16>
    %386 = vector.shape_cast %385 : vector<1x32x16xbf16> to vector<32x16xbf16>
    %cst_161 = arith.constant dense<0.000000e+00> : vector<16x16xf32>
    %387 = tpu.matmul %318, %386, %cst_161 {dimension_numbers = #tpu.dot_dimension_numbers<[1], [0], [0], [1], [0, 0, 1, 1], [], []>} : vector<16x32xbf16>, vector<32x16xbf16>, vector<16x16xf32> -> vector<16x16xf32>
    %388 = vector.shape_cast %387 : vector<16x16xf32> to vector<2x8x16xf32>
    %389 = vector.extract_strided_slice %388 {offsets = [0, 1, 0], sizes = [2, 5, 16], strides = [1, 1, 1]} : vector<2x8x16xf32> to vector<2x5x16xf32>
    %390 = arith.addf %384, %389 : vector<2x5x16xf32>
    %c2_162 = arith.constant 2 : index
    %c0_163 = arith.constant 0 : index
    %c0_164 = arith.constant 0 : index
    %391 = vector.load %arg10[%c2_162, %c0_163, %c0_164] : memref<4x32x16xbf16, #tpu.memory_space<vmem>>, vector<1x32x16xbf16>
    %392 = vector.shape_cast %391 : vector<1x32x16xbf16> to vector<32x16xbf16>
    %cst_165 = arith.constant dense<0.000000e+00> : vector<16x16xf32>
    %393 = tpu.matmul %318, %392, %cst_165 {dimension_numbers = #tpu.dot_dimension_numbers<[1], [0], [0], [1], [0, 0, 1, 1], [], []>} : vector<16x32xbf16>, vector<32x16xbf16>, vector<16x16xf32> -> vector<16x16xf32>
    %394 = vector.shape_cast %393 : vector<16x16xf32> to vector<2x8x16xf32>
    %395 = vector.extract_strided_slice %394 {offsets = [0, 2, 0], sizes = [2, 5, 16], strides = [1, 1, 1]} : vector<2x8x16xf32> to vector<2x5x16xf32>
    %396 = arith.addf %390, %395 : vector<2x5x16xf32>
    %c3 = arith.constant 3 : index
    %c0_166 = arith.constant 0 : index
    %c0_167 = arith.constant 0 : index
    %397 = vector.load %arg10[%c3, %c0_166, %c0_167] : memref<4x32x16xbf16, #tpu.memory_space<vmem>>, vector<1x32x16xbf16>
    %398 = vector.shape_cast %397 : vector<1x32x16xbf16> to vector<32x16xbf16>
    %cst_168 = arith.constant dense<0.000000e+00> : vector<16x16xf32>
    %399 = tpu.matmul %318, %398, %cst_168 {dimension_numbers = #tpu.dot_dimension_numbers<[1], [0], [0], [1], [0, 0, 1, 1], [], []>} : vector<16x32xbf16>, vector<32x16xbf16>, vector<16x16xf32> -> vector<16x16xf32>
    %400 = vector.shape_cast %399 : vector<16x16xf32> to vector<2x8x16xf32>
    %401 = vector.extract_strided_slice %400 {offsets = [0, 3, 0], sizes = [2, 5, 16], strides = [1, 1, 1]} : vector<2x8x16xf32> to vector<2x5x16xf32>
    %402 = arith.addf %396, %401 : vector<2x5x16xf32>
    %c0_169 = arith.constant 0 : index
    %c0_170 = arith.constant 0 : index
    %403 = vector.load %arg9[%c0_169, %c0_170] : memref<1x16xf32, #tpu.memory_space<vmem>>, vector<1x16xf32>
    %404 = vector.shape_cast %403 : vector<1x16xf32> to vector<1x1x16xf32>
    %405 = vector.broadcast %404 : vector<1x1x16xf32> to vector<2x5x16xf32>
    %406 = arith.addf %402, %405 : vector<2x5x16xf32>
    %cst_171 = arith.constant 0.000000e+00 : f32
    %407 = vector.broadcast %cst_171 : f32 to vector<2x5x16xf32>
    %408 = arith.maximumf %406, %407 : vector<2x5x16xf32>
    %cst_172 = arith.constant dense<0xFF800000> : vector<2x16xf32>
    %409 = vector.multi_reduction <maximumf>, %408, %cst_172 [1] : vector<2x5x16xf32> to vector<2x16xf32>
    %410 = arith.truncf %409 : vector<2x16xf32> to vector<2x16xbf16>
    %411 = vector.extract_strided_slice %319 {offsets = [32, 0], sizes = [16, 3], strides = [1, 1]} : vector<48x3xbf16> to vector<16x3xbf16>
    %cst_173 = arith.constant dense<0.000000e+00> : vector<2x3xf32>
    %412 = tpu.matmul %410, %411, %cst_173 {dimension_numbers = #tpu.dot_dimension_numbers<[1], [0], [0], [1], [0, 0, 1, 1], [], []>} : vector<2x16xbf16>, vector<16x3xbf16>, vector<2x3xf32> -> vector<2x3xf32>
    %413 = arith.addf %377, %412 : vector<2x3xf32>
    %cst_174 = arith.constant dense<0xFF800000> : vector<2xf32>
    %414 = vector.multi_reduction <maximumf>, %413, %cst_174 [1] : vector<2x3xf32> to vector<2xf32>
    %415 = vector.shape_cast %414 : vector<2xf32> to vector<2x1xf32>
    %416 = vector.broadcast %415 : vector<2x1xf32> to vector<2x3xf32>
    %417 = arith.subf %413, %416 : vector<2x3xf32>
    %418 = math.exp %417 : vector<2x3xf32>
    %cst_175 = arith.constant dense<0.000000e+00> : vector<2xf32>
    %419 = vector.multi_reduction <add>, %418, %cst_175 [1] : vector<2x3xf32> to vector<2xf32>
    %420 = vector.shape_cast %419 : vector<2xf32> to vector<2x1xf32>
    %421 = vector.broadcast %420 : vector<2x1xf32> to vector<2x3xf32>
    %422 = arith.divf %418, %421 : vector<2x3xf32>
    %c0_176 = arith.constant 0 : index
    %c0_177 = arith.constant 0 : index
    %423 = vector.load %arg37[%c0_176, %c0_177] : memref<2x3xf32, #tpu.memory_space<vmem>>, vector<2x3xf32>
    tpu.vector_store %arg37[%c0_176, %c0_177], %422 {strides = array<i32>} : memref<2x3xf32, #tpu.memory_space<vmem>>, vector<2x3xf32>,
    return
  }
  func.func @transform_0(%arg0: i32) -> (i32, i32) {
    %c0_i32 = arith.constant 0 : i32
    %c0_i32_0 = arith.constant 0 : i32
    %c0_i32_1 = arith.constant 0 : i32
    return %c0_i32, %c0_i32_0 : i32, i32
  }
  func.func @transform_1(%arg0: i32) -> (i32, i32, i32) {
    %c0_i32 = arith.constant 0 : i32
    %c0_i32_0 = arith.constant 0 : i32
    %c0_i32_1 = arith.constant 0 : i32
    %c0_i32_2 = arith.constant 0 : i32
    return %c0_i32, %c0_i32_0, %c0_i32_1 : i32, i32, i32
  }
  func.func @transform_2(%arg0: i32) -> (i32, i32) {
    %c0_i32 = arith.constant 0 : i32
    %c0_i32_0 = arith.constant 0 : i32
    %c0_i32_1 = arith.constant 0 : i32
    return %c0_i32, %c0_i32_0 : i32, i32
  }
  func.func @transform_3(%arg0: i32) -> (i32, i32) {
    %c0_i32 = arith.constant 0 : i32
    %c0_i32_0 = arith.constant 0 : i32
    %c0_i32_1 = arith.constant 0 : i32
    return %c0_i32, %c0_i32_0 : i32, i32
  }
  func.func @transform_4(%arg0: i32) -> (i32, i32) {
    %c0_i32 = arith.constant 0 : i32
    %c0_i32_0 = arith.constant 0 : i32
    %c0_i32_1 = arith.constant 0 : i32
    return %c0_i32, %c0_i32_0 : i32, i32
  }
  func.func @transform_5(%arg0: i32) -> (i32, i32, i32) {
    %c0_i32 = arith.constant 0 : i32
    %c0_i32_0 = arith.constant 0 : i32
    %c0_i32_1 = arith.constant 0 : i32
    %c0_i32_2 = arith.constant 0 : i32
    return %c0_i32, %c0_i32_0, %c0_i32_1 : i32, i32, i32
  }
  func.func @transform_6(%arg0: i32) -> (i32, i32) {
    %c0_i32 = arith.constant 0 : i32
    %c0_i32_0 = arith.constant 0 : i32
    %c0_i32_1 = arith.constant 0 : i32
    return %c0_i32, %c0_i32_0 : i32, i32
  }
  func.func @transform_7(%arg0: i32) -> (i32, i32, i32) {
    %c0_i32 = arith.constant 0 : i32
    %c0_i32_0 = arith.constant 0 : i32
    %c0_i32_1 = arith.constant 0 : i32
    %c0_i32_2 = arith.constant 0 : i32
    return %c0_i32, %c0_i32_0, %c0_i32_1 : i32, i32, i32
  }
  func.func @transform_8(%arg0: i32) -> (i32, i32) {
    %c0_i32 = arith.constant 0 : i32
    %c0_i32_0 = arith.constant 0 : i32
    %c0_i32_1 = arith.constant 0 : i32
    return %c0_i32, %c0_i32_0 : i32, i32
  }
  func.func @transform_9(%arg0: i32) -> (i32, i32, i32) {
    %c0_i32 = arith.constant 0 : i32
    %c0_i32_0 = arith.constant 0 : i32
    %c0_i32_1 = arith.constant 0 : i32
    %c0_i32_2 = arith.constant 0 : i32
    return %c0_i32, %c0_i32_0, %c0_i32_1 : i32, i32, i32
  }
  func.func @transform_10(%arg0: i32) -> (i32, i32) {
    %c0_i32 = arith.constant 0 : i32
    %c0_i32_0 = arith.constant 0 : i32
    %c0_i32_1 = arith.constant 0 : i32
    return %c0_i32, %c0_i32_0 : i32, i32
  }
  func.func @transform_11(%arg0: i32) -> (i32, i32) {
    %c0_i32 = arith.constant 0 : i32
    %c0_i32_0 = arith.constant 0 : i32
    %c0_i32_1 = arith.constant 0 : i32
    return %c0_i32, %c0_i32_0 : i32, i32
  }
  func.func @transform_12(%arg0: i32) -> (i32, i32) {
    %c0_i32 = arith.constant 0 : i32
    %c0_i32_0 = arith.constant 0 : i32
    %c0_i32_1 = arith.constant 0 : i32
    return %c0_i32, %c0_i32_0 : i32, i32
  }
  func.func @transform_13(%arg0: i32) -> (i32, i32) {
    %c0_i32 = arith.constant 0 : i32
    %c0_i32_0 = arith.constant 0 : i32
    %c0_i32_1 = arith.constant 0 : i32
    return %c0_i32, %c0_i32_0 : i32, i32
  }
  func.func @transform_14(%arg0: i32) -> (i32, i32) {
    %c0_i32 = arith.constant 0 : i32
    %c0_i32_0 = arith.constant 0 : i32
    %c0_i32_1 = arith.constant 0 : i32
    return %c0_i32, %c0_i32_0 : i32, i32
  }
  func.func @transform_15(%arg0: i32) -> (i32, i32) {
    %c0_i32 = arith.constant 0 : i32
    %c0_i32_0 = arith.constant 0 : i32
    %c0_i32_1 = arith.constant 0 : i32
    return %c0_i32, %c0_i32_0 : i32, i32
  }
  func.func @transform_16(%arg0: i32) -> (i32, i32) {
    %c0_i32 = arith.constant 0 : i32
    %c0_i32_0 = arith.constant 0 : i32
    %c0_i32_1 = arith.constant 0 : i32
    return %c0_i32, %c0_i32_0 : i32, i32
  }
  func.func @transform_17(%arg0: i32) -> (i32, i32) {
    %c0_i32 = arith.constant 0 : i32
    %c0_i32_0 = arith.constant 0 : i32
    %c0_i32_1 = arith.constant 0 : i32
    return %c0_i32, %c0_i32_0 : i32, i32
  }
  func.func @transform_18(%arg0: i32) -> (i32, i32) {
    %c0_i32 = arith.constant 0 : i32
    %c0_i32_0 = arith.constant 0 : i32
    %c0_i32_1 = arith.constant 0 : i32
    return %c0_i32, %c0_i32_0 : i32, i32
  }
  func.func @transform_19(%arg0: i32) -> (i32, i32) {
    %c0_i32 = arith.constant 0 : i32
    %c0_i32_0 = arith.constant 0 : i32
    %c0_i32_1 = arith.constant 0 : i32
    return %c0_i32, %c0_i32_0 : i32, i32
  }
  func.func @transform_20(%arg0: i32) -> (i32, i32) {
    %c0_i32 = arith.constant 0 : i32
    %c0_i32_0 = arith.constant 0 : i32
    %c0_i32_1 = arith.constant 0 : i32
    return %c0_i32, %c0_i32_0 : i32, i32
  }
  func.func @transform_21(%arg0: i32) -> (i32, i32) {
    %c0_i32 = arith.constant 0 : i32
    %c0_i32_0 = arith.constant 0 : i32
    %c0_i32_1 = arith.constant 0 : i32
    return %c0_i32, %c0_i32_0 : i32, i32
  }
  func.func @transform_22(%arg0: i32) -> (i32, i32) {
    %c0_i32 = arith.constant 0 : i32
    %c0_i32_0 = arith.constant 0 : i32
    %c0_i32_1 = arith.constant 0 : i32
    return %c0_i32, %c0_i32_0 : i32, i32
  }
  func.func @transform_23(%arg0: i32) -> (i32, i32) {
    %c0_i32 = arith.constant 0 : i32
    %c0_i32_0 = arith.constant 0 : i32
    %c0_i32_1 = arith.constant 0 : i32
    return %c0_i32, %c0_i32_0 : i32, i32
  }
  func.func @transform_24(%arg0: i32) -> (i32, i32) {
    %c0_i32 = arith.constant 0 : i32
    %c0_i32_0 = arith.constant 0 : i32
    %c0_i32_1 = arith.constant 0 : i32
    return %c0_i32, %c0_i32_0 : i32, i32
  }
  func.func @transform_25(%arg0: i32) -> (i32, i32) {
    %c0_i32 = arith.constant 0 : i32
    %c0_i32_0 = arith.constant 0 : i32
    %c0_i32_1 = arith.constant 0 : i32
    return %c0_i32, %c0_i32_0 : i32, i32
  }
  func.func @transform_26(%arg0: i32) -> (i32, i32) {
    %c0_i32 = arith.constant 0 : i32
    %c0_i32_0 = arith.constant 0 : i32
    %c0_i32_1 = arith.constant 0 : i32
    return %c0_i32, %c0_i32_0 : i32, i32
  }
  func.func @transform_27(%arg0: i32) -> (i32, i32) {
    %c0_i32 = arith.constant 0 : i32
    %c0_i32_0 = arith.constant 0 : i32
    %c0_i32_1 = arith.constant 0 : i32
    return %c0_i32, %c0_i32_0 : i32, i32
  }
  func.func @transform_28(%arg0: i32) -> (i32, i32) {
    %c0_i32 = arith.constant 0 : i32
    %c0_i32_0 = arith.constant 0 : i32
    %c0_i32_1 = arith.constant 0 : i32
    return %c0_i32, %c0_i32_0 : i32, i32
  }
  func.func @transform_29(%arg0: i32) -> (i32, i32) {
    %c0_i32 = arith.constant 0 : i32
    %c0_i32_0 = arith.constant 0 : i32
    %c0_i32_1 = arith.constant 0 : i32
    return %c0_i32, %c0_i32_0 : i32, i32
  }
  func.func @transform_30(%arg0: i32) -> (i32, i32) {
    %c0_i32 = arith.constant 0 : i32
    %c0_i32_0 = arith.constant 0 : i32
    %c0_i32_1 = arith.constant 0 : i32
    return %c0_i32, %c0_i32_0 : i32, i32
  }
  func.func @transform_31(%arg0: i32) -> (i32, i32) {
    %c0_i32 = arith.constant 0 : i32
    %c0_i32_0 = arith.constant 0 : i32
    %c0_i32_1 = arith.constant 0 : i32
    return %c0_i32, %c0_i32_0 : i32, i32
  }
  func.func @transform_32(%arg0: i32) -> (i32, i32) {
    %c0_i32 = arith.constant 0 : i32
    %c0_i32_0 = arith.constant 0 : i32
    %c0_i32_1 = arith.constant 0 : i32
    return %c0_i32, %c0_i32_0 : i32, i32
  }
  func.func @transform_33(%arg0: i32) -> (i32, i32) {
    %c0_i32 = arith.constant 0 : i32
    %c0_i32_0 = arith.constant 0 : i32
    %c0_i32_1 = arith.constant 0 : i32
    return %c0_i32, %c0_i32_0 : i32, i32
  }
  func.func @transform_34(%arg0: i32) -> (i32, i32) {
    %c0_i32 = arith.constant 0 : i32
    %c0_i32_0 = arith.constant 0 : i32
    %c0_i32_1 = arith.constant 0 : i32
    return %c0_i32, %c0_i32_0 : i32, i32
  }
  func.func @transform_35(%arg0: i32) -> (i32, i32) {
    %c0_i32 = arith.constant 0 : i32
    %c0_i32_0 = arith.constant 0 : i32
    %c0_i32_1 = arith.constant 0 : i32
    return %c0_i32, %c0_i32_0 : i32, i32
  }
  func.func @transform_36(%arg0: i32) -> (i32, i32) {
    %c0_i32 = arith.constant 0 : i32
    %c0_i32_0 = arith.constant 0 : i32
    %c0_i32_1 = arith.constant 0 : i32
    return %c0_i32, %c0_i32_0 : i32, i32
  }
}

</mosaic_0001>

<bundles_post_ra>
// kernel: bert_cnn_forward.1
= control target key start
LH: loop header
LB: loop body
LE: loop exit
PB: predicated region body
PF: predicated region fallthrough
CT: control target
= control target key end

     0   :  { %s3585_s6 = smov 1   ;;  %s3586_s10 = smov 2   ;;  %s4222_s0 = inlined_call_operand.smem [shape: u32[37], index: -1, kind: input, shape index: {}] }
   0x1   :  { %s3637_s5 = sld [smem:[%s4222_s0]]   ;;  %s3587_s14 = smov 3  }
   0x2   :  { %s3642_s9 = sld [smem:[%s4222_s0 + %s3585_s6]]   ;;  %s3588_s18 = smov 4  }
   0x3   :  { %s3647_s13 = sld [smem:[%s4222_s0 + %s3586_s10]]   ;;  %s3589_s22 = smov 5  }
   0x4   :  { %s3652_s17 = sld [smem:[%s4222_s0 + %s3587_s14]]   ;;  %s3590_s26 = smov 6  }
   0x5   :  { %s3657_s21 = sld [smem:[%s4222_s0 + %s3588_s18]]   ;;  %s3591_s30 = smov 7  }
   0x6   :  { %s3662_s25 = sld [smem:[%s4222_s0 + %s3589_s22]]   ;;  %s3592_s4 = smov 8  }
   0x7   :  { %s3667_s29 = sld [smem:[%s4222_s0 + %s3590_s26]]   ;;  %s3593_s10 = smov 9  }
   0x8   :  { %s3672_s3 = sld [smem:[%s4222_s0 + %s3591_s30]]   ;;  %s3594_s15 = smov 10  }
   0x9   :  { %4228 = sst [smem:[#allocation5_spill]] %s3647_s13  ;;  %s3595_s20 = smov 11  }
   0xa   :  { %4229 = sst [smem:[#allocation6_spill]] %s3652_s17  ;;  %s3596_s26 = smov 12  }
   0xb   :  { %4230 = sst [smem:[#allocation7_spill]] %s3657_s21  ;;  %s3597_s1 = smov 13  }
   0xc   :  { %4231 = sst [smem:[#allocation8_spill]] %s3662_s25  ;;  %s3598_s7 = smov 14  }
   0xd   :  { %4232 = sst [smem:[#allocation9_spill]] %s3667_s29  ;;  %s3600_s22 = smov 16  }
   0xe   :  { %4233 = sst [smem:[#allocation10_spill]] %s3672_s3  ;;  %s3601_s28 = smov 17  }
   0xf   :  { %s3677_s8 = sld [smem:[%s4222_s0 + %s3592_s4]]  }
  0x10   :  { %s3682_s14 = sld [smem:[%s4222_s0 + %s3593_s10]]  }
  0x11   :  { %s3687_s19 = sld [smem:[%s4222_s0 + %s3594_s15]]   ;;  %s3599_s15 = smov 15  }
  0x12   :  { %s3692_s24 = sld [smem:[%s4222_s0 + %s3595_s20]]  }
  0x13   :  { %s3697_s30 = sld [smem:[%s4222_s0 + %s3596_s26]]  }
  0x14   :  { %s3702_s6 = sld [smem:[%s4222_s0 + %s3597_s1]]  }
  0x15   :  { %4234 = sst [smem:[#allocation11_spill]] %s3677_s8 }
  0x16   :  { %4235 = sst [smem:[#allocation12_spill]] %s3682_s14 }
  0x17   :  { %s3707_s12 = sld [smem:[%s4222_s0 + %s3598_s7]]   ;;  %s3602_s7 = smov 18  }
  0x18   :  { %s3712_s20 = sld [smem:[%s4222_s0 + %s3599_s15]]   ;;  %s3603_s15 = smov 19  }
  0x19   :  { %s3717_s27 = sld [smem:[%s4222_s0 + %s3600_s22]]   ;;  %s3604_s22 = smov 20  }
  0x1a   :  { %s3722_s4 = sld [smem:[%s4222_s0 + %s3601_s28]]   ;;  %s3605_s28 = smov 21  }
  0x1b   :  { %s3727_s13 = sld [smem:[%s4222_s0 + %s3602_s7]]   ;;  %s3606_s7 = smov 22  }
  0x1c   :  { %s3732_s8 = sld [smem:[%s4222_s0 + %s3603_s15]]   ;;  %s3607_s15 = smov 23  }
  0x1d   :  { %s3737_s29 = sld [smem:[%s4222_s0 + %s3604_s22]]   ;;  %s3608_s22 = smov 24  }
  0x1e   :  { %s3742_s21 = sld [smem:[%s4222_s0 + %s3605_s28]]   ;;  %s3609_s28 = smov 25  }
  0x1f   :  { %s3747_s17 = sld [smem:[%s4222_s0 + %s3606_s7]]   ;;  %s3610_s7 = smov 26  }
  0x20   :  { %s3752_s14 = sld [smem:[%s4222_s0 + %s3607_s15]]   ;;  %s3611_s15 = smov 27  }
  0x21   :  { %4236 = sst [smem:[#allocation13_spill]] %s3727_s13 }
  0x22   :  { %4237 = sst [smem:[#allocation14_spill]] %s3732_s8 }
  0x23   :  { %s3757_s3 = sld [smem:[%s4222_s0 + %s3608_s22]]   ;;  %s3612_s22 = smov 28  }
  0x24   :  { %s3762_s25 = sld [smem:[%s4222_s0 + %s3609_s28]]   ;;  %s3613_s28 = smov 29  }
  0x25   :  { %s3767_s13 = sld [smem:[%s4222_s0 + %s3610_s7]]   ;;  %s3614_s7 = smov 30  }
  0x26   :  { %s3772_s8 = sld [smem:[%s4222_s0 + %s3611_s15]]   ;;  %s3615_s15 = smov 31  }
  0x29   :  { %4238 = sst [smem:[#allocation15_spill]] %s3757_s3 }
  0x2a   :  { %4239 = sst [smem:[#allocation16_spill]] %s3762_s25 }
  0x2b   :  { %4240 = sst [smem:[#allocation17_spill]] %s3767_s13 }
  0x2c   :  { %4241 = sst [smem:[#allocation18_spill]] %s3772_s8 }
  0x2d   :  { %s3777_s3 = sld [smem:[%s4222_s0 + %s3612_s22]]   ;;  %s3616_s22 = smov 32  }
  0x2e   :  { %s3782_s25 = sld [smem:[%s4222_s0 + %s3613_s28]]   ;;  %s3617_s28 = smov 33  }
  0x2f   :  { %s3787_s13 = sld [smem:[%s4222_s0 + %s3614_s7]]   ;;  %s3618_s7 = smov 34  }
  0x30   :  { %s3792_s8 = sld [smem:[%s4222_s0 + %s3615_s15]]   ;;  %s3619_s15 = smov 35  }
  0x33   :  { %4242 = sst [smem:[#allocation19_spill]] %s3777_s3 }
  0x34   :  { %4243 = sst [smem:[#allocation20_spill]] %s3782_s25 }
  0x35   :  { %4244 = sst [smem:[#allocation21_spill]] %s3787_s13 }
  0x36   :  { %4245 = sst [smem:[#allocation22_spill]] %s3792_s8 }
  0x37   :  { %s3797_s3 = sld [smem:[%s4222_s0 + %s3616_s22]]   ;;  %s3620_s22 = smov 36  }
  0x38   :  { %s3802_s25 = sld [smem:[%s4222_s0 + %s3617_s28]]  }
  0x39   :  { %s3807_s13 = sld [smem:[%s4222_s0 + %s3618_s7]]  }
  0x3a   :  { %s3812_s8 = sld [smem:[%s4222_s0 + %s3619_s15]]  }
  0x3d   :  { %4246 = sst [smem:[#allocation23_spill]] %s3797_s3 }
  0x3e   :  { %s3817_s3 = sld [smem:[%s4222_s0 + %s3620_s22]]  }
  0x3f   :  { %v152_v0 = vld [vmem:[%s3637_s5] sm:$0xff]  ;;  %vm154_vm0 = vcmask 261120   ;;  %v153_v1 = vld [vmem:[%s3637_s5 + $0x8] sm:$0xff] }
  0x40   :  { %v155_v2 = vsel %vm154_vm0, %v152_v0, 0.0  ;;  %v158_v3 = vsel %vm154_vm0, %v153_v1, 0.0 }
  0x41   :  { %156 = vadd.xlane.f32.xlu0 %v155_v2 }
  0x45   :  { %159 = vadd.xlane.f32.xlu0 %v158_v3 }
  0x46   :  { %78 = vsyncpa [#allocation3], 0  ;;  %v3456_v14 = vld [vmem:[%s3752_s14] sm:$0xff]   ;;  %v3621_v15 = vmov 0.0   ;;  %v3457_v16 = vld [vmem:[%s3752_s14 + $0x8] sm:$0xff]   ;;  %vm3622_vm1 = vmmov 0  }
  0x47   :  { %3137 = vmatprep.subr.bf16.mxu1 %v3621_v15  ;;  %3151 = vmatprep.subr.bf16.mxu0 %v3621_v15  ;;  %v2915_v25 = vld [vmem:[%s3692_s24] ss:$0 sm:$0xff]  ;;  %s3623_s0 = smov 96   ;;  %vm280_vm2 = vcmask 130048   ;;  %vm392_vm3 = vcmask 64512   ;;  %s3624_s5 = smov 64  }
  0x48   :  { %3138 = vmatpush3.bf16.msra.mxu1 %v3456_v14  ;;  %3141 = vmatprep.mubr.msk.bf16.mxu1 %vm3622_vm1, %v3621_v15  ;;  %v2916_v29 = vld [vmem:[%s3687_s19] ss:$0 sm:$0xff]  ;;  %v3871_v53 = vld [vmem:[%s3642_s9 + $0x1] ss:$0 sm:$0xff]  ;;  %s3626_s14 = smov 112   ;;  %vm422_vm4 = vcmask 1043456  }
  0x49   :  { %3139 = vmatprep.subr.bf16.mxu1 %v3621_v15  ;;  %3153 = vmatprep.mubr.msk.bf16.mxu0 %vm3622_vm1, %v3621_v15  ;;  %v2917_v34 = vld [vmem:[%s3712_s20] ss:$0 sm:$0xff]  ;;  %s3627_s19 = smov 48   ;;  %vm1022_vm5 = vcmask 523264   ;;  %s4252_s24 = sld [smem:[#allocation20_spill]]  ;;  %vm2162_vm6 = vcmask 129024  }
  0x4a   :  { %v3868_v48 = vld [vmem:[%s3642_s9] ss:$0 sm:$0xff]  ;;  %s3625_s9 = smov 80   ;;  %s4257_s20 = sld [smem:[#allocation22_spill]]  ;;  %vm2183_vm7 = vcmask 1041409   ;;  %vm2438_vm8 = vcmask 128000  }
  0x4b   :  { %s4260_s28 = sld [smem:[#allocation12_spill]]  ;;  %s4261_s1 = sld [smem:[#allocation6_spill]]  ;;  %vm2779_vm9 = vcmask 126976   ;;  %vm2852_vm10 = vcmask 17408  }
  0x4c   :  { %3140 = vmatpush3.bf16.msra.mxu1 %v3457_v16  ;;  %s4262_s2 = sld [smem:[#allocation7_spill]]  ;;  %s4263_s7 = sld [smem:[#allocation9_spill]] }
  0x4d   :  { %3145 = vmatprep.subr.bf16.mxu1 %v3621_v15  ;;  %s4264_s10 = sld [smem:[#allocation11_spill]]  ;;  %s4265_s11 = sld [smem:[#allocation5_spill]] }
  0x4e   :  { %s3628_s15 = smov [#allocation2]  }
  0x4f   :  { %s2871_s16 = sshll.u32 %s3628_s15, 4  ;;  %s2872_s16 = int_to_ptr.vmem [resolvable:$true] %s2871_s16 }
  0x50   :  { %s3561_s18 = scalar_lea.vmem %s2872_s16, 32  ;;  %p3566_p1 = scmp.lt.s32.totalorder %s2872_s16, %s2872_s16 }
  0x51   :  { %p3562_p0 = scmp.ne.s32.totalorder %s2872_s16, %s3561_s18  ;;  %p3567_p2 = scmp.lt.s32.totalorder %s3561_s18, %s3561_s18 }
  0x53   :  { %p3568_p3 = por %p3567_p2, %p3566_p1 }
  0x55   :  { %p3569_p4 = pnand %p3568_p3, %p3562_p0 }
  0xce   :  { %v157_v4 = vpop.xlane.xlu0 %156 }
  0xcf   :  { %v162_v5 = vmul.f32 0.03125, %v157_v4 }
  0xd1   :  { %v164_v6 = vsub.f32 %v152_v0, %v162_v5 }
  0xd2   :  { %v160_v7 = vpop.xlane.xlu0 %159 }
  0xd3   :  { %v163_v8 = vmul.f32 0.03125, %v160_v7  ;;  %v166_v9 = vmul.f32 %v164_v6, %v164_v6 }
  0xd5   :  { %v165_v10 = vsub.f32 %v153_v1, %v163_v8  ;;  %v168_v11 = vsel %vm154_vm0, %v166_v9, 0.0 }
  0xd6   :  { %169 = vadd.xlane.f32.xlu1 %v168_v11 }
  0xd7   :  { %v167_v12 = vmul.f32 %v165_v10, %v165_v10 }
  0xd9   :  { %v171_v13 = vsel %vm154_vm0, %v167_v12, 0.0 }
  0xda   :  { %172 = vadd.xlane.f32.xlu1 %v171_v13 }
 0x163   :  { %v170_v17 = vpop.xlane.xlu1 %169 }
 0x164   :  { %v174_v18 = vmul.f32 0.03125, %v170_v17 }
 0x166   :  { %v176_v19 = vadd.f32 1e-12, %v174_v18 }
 0x167   :  { %v173_v20 = vpop.xlane.xlu1 %172 }
 0x168   :  { %3497 = vrsqrt.f32 %v176_v19  ;;  %v175_v21 = vmul.f32 0.03125, %v173_v20  ;;  %v3458_v19 = vld [vmem:[%s3747_s17] sm:$0xff]  }
 0x16a   :  { %v177_v22 = vadd.f32 1e-12, %v175_v21 }
 0x16c   :  { %3499 = vrsqrt.f32 %v177_v22 }
 0x172   :  { %v3498_v23 = vpop.eup %3497 }
 0x173   :  { %v180_v24 = vmul.f32 %v3498_v23, %v164_v6 }
 0x175   :  { %v189_v28 = vmul.f32 %v2915_v25, %v180_v24 }
 0x176   :  { %v3500_v26 = vpop.eup %3499 }
 0x177   :  { %v181_v27 = vmul.f32 %v3500_v26, %v165_v10  ;;  %v3837_v31 = vadd.f32 %v2916_v29, %v189_v28 }
 0x179   :  { %v190_v30 = vmul.f32 %v2915_v25, %v181_v27 }
 0x17b   :  { %v3839_v32 = vadd.f32 %v2916_v29, %v190_v30 }
 0x17d   :  { %v202_v33 = vpack.c.bf16 %v3839_v32, %v3837_v31 }
 0x17f   :  { %3142 = vmatmul.mubr.msk.bf16.vlgmr.msra.gmra.mrb[0].mxu1 %vm154_vm0, %v202_v33 }
 0x180   :  { %3147 = vmatprep.mubr.msk.bf16.mxu1 %vm3622_vm1, %v3621_v15 }
 0x252   :  { %v263_v35 = vpop.f32.mrb[0].mxu1 }
 0x253   :  { %v264_v36 = vadd.f32 %v2917_v34, %v263_v35  ;;  %v3143_v37 = vpop.f32.mrb[1].mxu1 }
 0x254   :  { %v266_v38 = vpop.f32.mrb[2].mxu1 }
 0x255   :  { %v3847_v39 = vpack.c.bf16 %v264_v36, %v264_v36  ;;  %v267_v40 = vadd.f32 %v2917_v34, %v266_v38  ;;  %v3144_v41 = vpop.f32.mrb[3].mxu1 }
 0x257   :  { %v3849_v42 = vpack.c.bf16 %v267_v40, %v267_v40  ;;  %278 = vrot.lane.b32.xlu0 %v3847_v39, %s3623_s0 }
 0x259   :  { %328 = vrot.lane.b32.xlu1 %v3849_v42, %s3623_s0 }
 0x2c9   :  { %v279_v43 = vpop.permute.xlu0 %278 }
 0x2ca   :  { %v285_v44 = vsel %vm280_vm2, %v279_v43, 0 }
 0x2cb   :  { %3146 = vmatpush3.bf16.xpose.msra.mxu1 %v285_v44  ;;  %v329_v45 = vpop.permute.xlu1 %328 }
 0x2cc   :  { %v334_v46 = vsel %vm280_vm2, %v329_v45, 0  ;;  %3157 = vmatprep.subr.bf16.mxu1 %v3621_v15 }
 0x2cd   :  { %3152 = vmatpush3.bf16.xpose.msra.mxu0 %v334_v46 }
 0x2ce   :  { %3163 = vmatprep.subr.bf16.mxu0 %v3621_v15 }
 0x2d2   :  { %3148 = vmatmul.mubr.msk.bf16.vlgmr.msra.gmra.mrb[4].mxu1 %vm280_vm2, %v3847_v39 }
 0x2d3   :  { %3159 = vmatprep.mubr.msk.bf16.mxu1 %vm3622_vm1, %v3621_v15 }
 0x2d4   :  { %3154 = vmatmul.mubr.msk.bf16.vlgmr.msra.gmra.mrb[0].mxu0 %vm280_vm2, %v3849_v42 }
 0x2d5   :  { %3165 = vmatprep.mubr.msk.bf16.mxu0 %vm3622_vm1, %v3621_v15 }
 0x3a5   :  { %v321_v47 = vpop.f32.mrb[4].mxu1 }
 0x3a6   :  { %v376_v49 = vmul.f32 0.25, %v321_v47  ;;  %v3149_v50 = vpop.f32.mrb[5].mxu1 }
 0x3a7   :  { %v324_v51 = vpop.f32.mrb[6].mxu1  ;;  %v370_v52 = vpop.f32.mrb[0].mxu0 }
 0x3a8   :  { %v377_v54 = vmul.f32 0.25, %v370_v52  ;;  %v3150_v55 = vpop.f32.mrb[7].mxu1  ;;  %v3155_v56 = vpop.f32.mrb[1].mxu0  ;;  %v390_v57 = vadd.f32 %v3868_v48, %v376_v49 }
 0x3a9   :  { %v373_v58 = vpop.f32.mrb[2].mxu0 }
 0x3aa   :  { %v3156_v59 = vpop.f32.mrb[3].mxu0  ;;  %v393_v60 = vsel %vm392_vm3, %v390_v57, -inf  ;;  %v391_v61 = vadd.f32 %v3871_v53, %v377_v54 }
 0x3ab   :  { %394 = vmax.xlane.f32.xlu1 %v393_v60 }
 0x3ac   :  { %v396_v62 = vsel %vm392_vm3, %v391_v61, -inf }
 0x3ad   :  { %397 = vmax.xlane.f32.xlu0 %v396_v62 }
 0x438   :  { %v395_v63 = vpop.xlane.xlu1 %394 }
 0x439   :  { %v399_v0 = vsub.f32 %v390_v57, %v395_v63 }
 0x43a   :  { %v398_v1 = vpop.xlane.xlu0 %397 }
 0x43b   :  { %v401_v2 = vmul.f32 1.442695, %v399_v0  ;;  %v400_v3 = vsub.f32 %v391_v61, %v398_v1 }
 0x43d   :  { %3501 = vpow2.f32 %v401_v2  ;;  %v403_v4 = vmul.f32 1.442695, %v400_v3 }
 0x43f   :  { %3503 = vpow2.f32 %v403_v4 }
 0x447   :  { %v3502_v5 = vpop.eup %3501 }
 0x448   :  { %v405_v6 = vsel %vm392_vm3, %v3502_v5, 0.0 }
 0x449   :  { %v3504_v7 = vpop.eup %3503  ;;  %406 = vadd.xlane.f32.xlu0 %v405_v6 }
 0x44a   :  { %v408_v8 = vsel %vm392_vm3, %v3504_v7, 0.0 }
 0x44b   :  { %409 = vadd.xlane.f32.xlu1 %v408_v8 }
 0x45c   :  { %466 = vrot.lane.b32.xlu1 %v3849_v42, %s3624_s5 }
 0x45f   :  { %417 = vrot.lane.b32.xlu0 %v3847_v39, %s3624_s5 }
 0x460   :  { %575 = vrot.lane.b32.xlu1 %v3847_v39, %s3625_s9 }
 0x463   :  { %573 = vrot.lane.b32.xlu0 %v3847_v39, %s3626_s14 }
 0x464   :  { %625 = vrot.lane.b32.xlu1 %v3849_v42, %s3625_s9 }
 0x468   :  { %623 = vrot.lane.b32.xlu1 %v3849_v42, %s3626_s14 }
 0x4d6   :  { %v407_v9 = vpop.xlane.xlu0 %406 }
 0x4d7   :  { %3505 = vrcp.f32 %v407_v9 }
 0x4d8   :  { %v410_v10 = vpop.xlane.xlu1 %409 }
 0x4d9   :  { %3507 = vrcp.f32 %v410_v10 }
 0x4da   :  { %v418_v11 = vpop.permute.xlu0 %417 }
 0x4db   :  { %v424_v12 = vsel %vm422_vm4, %v418_v11, 0 }
 0x4dc   :  { %3158 = vmatpush3.bf16.msra.mxu1 %v424_v12  ;;  %v467_v13 = vpop.permute.xlu1 %466 }
 0x4dd   :  { %v472_v14 = vsel %vm422_vm4, %v467_v13, 0  ;;  %3169 = vmatprep.subr.bf16.mxu1 %v3621_v15 }
 0x4de   :  { %3164 = vmatpush3.bf16.msra.mxu0 %v472_v14  ;;  %v574_v25 = vpop.permute.xlu0 %573 }
 0x4df   :  { %3175 = vmatprep.subr.bf16.mxu0 %v3621_v15 }
 0x4e0   :  { %v576_v22 = vpop.permute.xlu1 %575 }
 0x4e1   :  { %v3506_v16 = vpop.eup %3505  ;;  %v581_v24 = vsel %vm280_vm2, %v576_v22, 0 }
 0x4e2   :  { %v413_v17 = vmul.f32 %v3506_v16, %v3502_v5 }
 0x4e3   :  { %v3508_v18 = vpop.eup %3507 }
 0x4e4   :  { %v414_v20 = vmul.f32 %v3508_v18, %v3504_v7  ;;  %v415_v21 = vpack.c.bf16 %v413_v17, %v413_v17  ;;  %v626_v27 = vpop.permute.xlu1 %625 }
 0x4e5   :  { %v631_v37 = vsel %vm280_vm2, %v626_v27, 0 }
 0x4e6   :  { %3160 = vmatmul.mubr.msk.bf16.vlgmr.msra.gmra.mrb[8].mxu1 %vm392_vm3, %v415_v21  ;;  %v416_v23 = vpack.c.bf16 %v414_v20, %v414_v20 }
 0x4e7   :  { %3170 = vmatpush3.bf16.msra.mxu1 %v3458_v19  ;;  %3171 = vmatprep.mubr.msk.bf16.mxu1 %vm3622_vm1, %v3621_v15  ;;  %v3459_v19 = vld [vmem:[%s3747_s17 + $0x8] sm:$0xff]   ;;  %s4247_s17 = sld [smem:[#allocation14_spill]] }
 0x4e8   :  { %3166 = vmatmul.mubr.msk.bf16.vlgmr.msra.gmra.mrb[4].mxu0 %vm392_vm3, %v416_v23  ;;  %3181 = vmatprep.subr.bf16.mxu1 %v3621_v15  ;;  %v624_v44 = vpop.permute.xlu1 %623 }
 0x4e9   :  { %3176 = vmatpush3.bf16.xpose.msra.mxu0 %v581_v24  ;;  %3177 = vmatprep.mubr.msk.bf16.mxu0 %vm3622_vm1, %v3621_v15 }
 0x4ea   :  { %3187 = vmatprep.subr.bf16.mxu0 %v3621_v15 }
 0x4f0   :  { %3178 = vmatmul.mubr.msk.bf16.vlgmr.msra.gmra.mrb[8].mxu0 %vm280_vm2, %v574_v25 }
 0x4f1   :  { %3189 = vmatprep.mubr.msk.bf16.mxu0 %vm3622_vm1, %v3621_v15 }
 0x5b9   :  { %v460_v26 = vpop.f32.mrb[8].mxu1 }
 0x5ba   :  { %v3161_v28 = vpop.f32.mrb[9].mxu1 }
 0x5bb   :  { %v463_v29 = vpop.f32.mrb[10].mxu1  ;;  %v508_v30 = vpop.f32.mrb[4].mxu0 }
 0x5bc   :  { %v514_v33 = vpack.c.bf16 %v508_v30, %v460_v26  ;;  %v3162_v34 = vpop.f32.mrb[11].mxu1  ;;  %v3167_v35 = vpop.f32.mrb[5].mxu0  ;;  %v2929_v29 = vld [vmem:[%s3707_s12] ss:$0 sm:$0xff]  ;;  %s4255_s12 = sld [smem:[#allocation16_spill]] }
 0x5bd   :  { %v511_v36 = vpop.f32.mrb[6].mxu0 }
 0x5be   :  { %v3168_v38 = vpop.f32.mrb[7].mxu0  ;;  %3172 = vmatmul.mubr.msk.bf16.vlgmr.msra.gmra.mrb[12].mxu1 %vm280_vm2, %v514_v33 }
 0x5bf   :  { %3182 = vmatpush3.bf16.xpose.msra.mxu1 %v631_v37  ;;  %3183 = vmatprep.mubr.msk.bf16.mxu1 %vm3622_vm1, %v3621_v15 }
 0x5c0   :  { %3193 = vmatprep.subr.bf16.mxu1 %v3621_v15 }
 0x5c3   :  { %v617_v40 = vpop.f32.mrb[8].mxu0 }
 0x5c4   :  { %v673_v41 = vmul.f32 0.25, %v617_v40  ;;  %v3179_v43 = vpop.f32.mrb[9].mxu0 }
 0x5c5   :  { %v620_v45 = vpop.f32.mrb[10].mxu0 }
 0x5c6   :  { %v3180_v46 = vpop.f32.mrb[11].mxu0  ;;  %3184 = vmatmul.mubr.msk.bf16.vlgmr.msra.gmra.mrb[16].mxu1 %vm280_vm2, %v624_v44  ;;  %v675_v47 = vadd.f32 %v3868_v48, %v673_v41 }
 0x5c7   :  { %3195 = vmatprep.mubr.msk.bf16.mxu1 %vm3622_vm1, %v3621_v15 }
 0x5c8   :  { %v677_v49 = vsel %vm392_vm3, %v675_v47, -inf }
 0x5c9   :  { %678 = vmax.xlane.f32.xlu0 %v677_v49 }
 0x656   :  { %v679_v50 = vpop.xlane.xlu0 %678 }
 0x657   :  { %v683_v51 = vsub.f32 %v675_v47, %v679_v50 }
 0x659   :  { %v685_v52 = vmul.f32 1.442695, %v683_v51 }
 0x65b   :  { %3509 = vpow2.f32 %v685_v52 }
 0x665   :  { %v3510_v54 = vpop.eup %3509 }
 0x666   :  { %v689_v55 = vsel %vm392_vm3, %v3510_v54, 0.0 }
 0x667   :  { %690 = vadd.xlane.f32.xlu0 %v689_v55 }
 0x691   :  { %v558_v56 = vpop.f32.mrb[12].mxu1 }
 0x692   :  { %v3173_v57 = vpop.f32.mrb[13].mxu1  ;;  %v571_v30 = vadd.f32 %v2929_v29, %v558_v56 }
 0x693   :  { %v561_v58 = vpop.f32.mrb[14].mxu1  ;;  %v3461_v57 = vld [vmem:[%s3737_s29 + $0x8] sm:$0xff]  }
 0x694   :  { %v3174_v59 = vpop.f32.mrb[15].mxu1  ;;  %v572_v34 = vadd.f32 %v2929_v29, %v561_v58 }
 0x699   :  { %v667_v60 = vpop.f32.mrb[16].mxu1 }
 0x69a   :  { %v674_v61 = vmul.f32 0.25, %v667_v60  ;;  %v3185_v62 = vpop.f32.mrb[17].mxu1 }
 0x69b   :  { %v670_v63 = vpop.f32.mrb[18].mxu1 }
 0x69c   :  { %v3186_v0 = vpop.f32.mrb[19].mxu1  ;;  %v676_v1 = vadd.f32 %v3871_v53, %v674_v61 }
 0x69e   :  { %v680_v2 = vsel %vm392_vm3, %v676_v1, -inf }
 0x69f   :  { %681 = vmax.xlane.f32.xlu1 %v680_v2 }
 0x6b0   :  { %749 = vrot.lane.b32.xlu1 %v3849_v42, %s3627_s19 }
 0x6f4   :  { %v691_v10 = vpop.xlane.xlu0 %690 }
 0x72c   :  { %v682_v3 = vpop.xlane.xlu1 %681 }
 0x72d   :  { %v684_v4 = vsub.f32 %v676_v1, %v682_v3  ;;  %v2936_v1 = vld [vmem:[%s3722_s4] ss:$0 sm:$0xff]  ;;  %s4259_s4 = sld [smem:[#allocation10_spill]] }
 0x72f   :  { %v687_v5 = vmul.f32 1.442695, %v684_v4 }
 0x730   :  { %v750_v6 = vpop.permute.xlu1 %749 }
 0x731   :  { %3511 = vpow2.f32 %v687_v5  ;;  %v755_v7 = vsel %vm422_vm4, %v750_v6, 0  ;;  %v2937_v6 = vld [vmem:[%s3717_s27] ss:$0 sm:$0xff]  ;;  %s4258_s27 = sld [smem:[#allocation21_spill]] }
 0x732   :  { %3194 = vmatpush3.bf16.msra.mxu1 %v755_v7  ;;  %3513 = vrcp.f32 %v691_v10 }
 0x733   :  { %3205 = vmatprep.subr.bf16.mxu1 %v3621_v15 }
 0x73b   :  { %v3512_v8 = vpop.eup %3511 }
 0x73c   :  { %v692_v9 = vsel %vm392_vm3, %v3512_v8, 0.0  ;;  %v3514_v42 = vpop.eup %3513 }
 0x73d   :  { %693 = vadd.xlane.f32.xlu0 %v692_v9  ;;  %v697_v12 = vmul.f32 %v3514_v42, %v3510_v54  ;;  %v3462_v42 = vld [vmem:[%s3742_s21] sm:$0xff]  }
 0x73f   :  { %v699_v16 = vpack.c.bf16 %v697_v12, %v697_v12  ;;  %v3464_v12 = vld [vmem:[%s3742_s21 + $0x10] sm:$0xff]  }
 0x753   :  { %701 = vrot.lane.b32.xlu0 %v3847_v39, %s3627_s19 }
 0x7ca   :  { %v694_v11 = vpop.xlane.xlu0 %693 }
 0x7cb   :  { %3515 = vrcp.f32 %v694_v11  ;;  %v3463_v11 = vld [vmem:[%s3742_s21 + $0x8] sm:$0xff]  }
 0x7ce   :  { %v702_v13 = vpop.permute.xlu0 %701 }
 0x7cf   :  { %v707_v14 = vsel %vm422_vm4, %v702_v13, 0  ;;  %v3465_v13 = vld [vmem:[%s3742_s21 + $0x18] sm:$0xff]   ;;  %s4248_s21 = sld [smem:[#allocation13_spill]] }
 0x7d0   :  { %3188 = vmatpush3.bf16.msra.mxu0 %v707_v14  ;;  %v2938_v14 = vld [vmem:[%s3697_s30] ss:$0 sm:$0xff]  ;;  %s4253_s30 = sld [smem:[#allocation19_spill]] }
 0x7d1   :  { %3199 = vmatprep.subr.bf16.mxu0 %v3621_v15 }
 0x7d3   :  { %3190 = vmatmul.mubr.msk.bf16.vlgmr.msra.gmra.mrb[12].mxu0 %vm392_vm3, %v699_v16 }
 0x7d4   :  { %3201 = vmatprep.mubr.msk.bf16.mxu0 %vm3622_vm1, %v3621_v15  ;;  %3200 = vmatpush3.bf16.msra.mxu0 %v3459_v19 }
 0x7d5   :  { %v3516_v39 = vpop.eup %3515  ;;  %3213 = vmatprep.subr.bf16.mxu0 %v3621_v15 }
 0x7d6   :  { %v698_v17 = vmul.f32 %v3516_v39, %v3512_v8 }
 0x7d8   :  { %v700_v18 = vpack.c.bf16 %v698_v17, %v698_v17 }
 0x7da   :  { %3196 = vmatmul.mubr.msk.bf16.vlgmr.msra.gmra.mrb[20].mxu1 %vm392_vm3, %v700_v18 }
 0x7db   :  { %3209 = vmatprep.mubr.msk.bf16.mxu1 %vm3622_vm1, %v3621_v15 }
 0x8a6   :  { %v743_v20 = vpop.f32.mrb[12].mxu0 }
 0x8a7   :  { %v3191_v21 = vpop.f32.mrb[13].mxu0 }
 0x8a8   :  { %v746_v22 = vpop.f32.mrb[14].mxu0 }
 0x8a9   :  { %v3192_v23 = vpop.f32.mrb[15].mxu0 }
 0x8ad   :  { %v791_v24 = vpop.f32.mrb[20].mxu1 }
 0x8ae   :  { %v797_v25 = vpack.c.bf16 %v791_v24, %v743_v20  ;;  %v3197_v26 = vpop.f32.mrb[21].mxu1 }
 0x8af   :  { %v794_v27 = vpop.f32.mrb[22].mxu1 }
 0x8b0   :  { %v3198_v28 = vpop.f32.mrb[23].mxu1  ;;  %3202 = vmatmul.mubr.msk.bf16.vlgmr.msra.gmra.mrb[16].mxu0 %vm280_vm2, %v797_v25 }
 0x8b1   :  { %3221 = vmatprep.mubr.msk.bf16.mxu0 %vm3622_vm1, %v3621_v15  ;;  %3214 = vmatpush3.bf16.msra.mxu0 %v3462_v42 }
 0x8b2   :  { %3215 = vmatprep.subr.bf16.mxu0 %v3621_v15 }
 0x8b5   :  { %3216 = vmatpush3.bf16.msra.mxu0 %v3463_v11 }
 0x8b6   :  { %3217 = vmatprep.subr.bf16.mxu0 %v3621_v15 }
 0x8b9   :  { %3218 = vmatpush3.bf16.msra.mxu0 %v3464_v12 }
 0x8ba   :  { %3219 = vmatprep.subr.bf16.mxu0 %v3621_v15 }
 0x8bd   :  { %3220 = vmatpush3.bf16.msra.mxu0 %v3465_v13 }
 0x8be   :  { %3239 = vmatprep.subr.bf16.mxu0 %v3621_v15 }
 0x983   :  { %v841_v33 = vpop.f32.mrb[16].mxu0 }
 0x984   :  { %v848_v35 = vadd.f32 %v841_v33, %v571_v30  ;;  %v3203_v36 = vpop.f32.mrb[17].mxu0 }
 0x985   :  { %v844_v37 = vpop.f32.mrb[18].mxu0 }
 0x986   :  { %v849_v38 = vadd.f32 %v844_v37, %v572_v34  ;;  %v3204_v40 = vpop.f32.mrb[19].mxu0  ;;  %v850_v41 = vadd.f32 %v848_v35, %v3837_v31 }
 0x988   :  { %v852_v43 = vsel %vm154_vm0, %v850_v41, 0.0  ;;  %v851_v44 = vadd.f32 %v849_v38, %v3839_v32  ;;  %v3460_v32 = vld [vmem:[%s3737_s29] sm:$0xff]   ;;  %s4249_s29 = sld [smem:[#allocation18_spill]] }
 0x989   :  { %853 = vadd.xlane.f32.xlu1 %v852_v43  ;;  %3206 = vmatpush3.bf16.msra.mxu1 %v3460_v32 }
 0x98a   :  { %v855_v45 = vsel %vm154_vm0, %v851_v44, 0.0  ;;  %3207 = vmatprep.subr.bf16.mxu1 %v3621_v15 }
 0x98b   :  { %856 = vadd.xlane.f32.xlu0 %v855_v45 }
 0x98d   :  { %3208 = vmatpush3.bf16.msra.mxu1 %v3461_v57 }
 0x98e   :  { %3225 = vmatprep.subr.bf16.mxu1 %v3621_v15 }
 0xa16   :  { %v854_v46 = vpop.xlane.xlu1 %853 }
 0xa17   :  { %v858_v47 = vmul.f32 0.03125, %v854_v46 }
 0xa18   :  { %v857_v49 = vpop.xlane.xlu0 %856 }
 0xa19   :  { %v860_v50 = vsub.f32 %v850_v41, %v858_v47  ;;  %v859_v51 = vmul.f32 0.03125, %v857_v49 }
 0xa1b   :  { %v861_v52 = vsub.f32 %v851_v44, %v859_v51  ;;  %v862_v54 = vmul.f32 %v860_v50, %v860_v50  ;;  %v2942_v44 = vld [vmem:[%s3702_s6] ss:$0 sm:$0xff]  ;;  %s4254_s6 = sld [smem:[#allocation15_spill]] }
 0xa1d   :  { %v864_v55 = vsel %vm154_vm0, %v862_v54, 0.0  ;;  %v863_v31 = vmul.f32 %v861_v52, %v861_v52 }
 0xa1e   :  { %865 = vadd.xlane.f32.xlu0 %v864_v55 }
 0xa1f   :  { %v867_v56 = vsel %vm154_vm0, %v863_v31, 0.0 }
 0xa20   :  { %868 = vadd.xlane.f32.xlu1 %v867_v56 }
 0xaab   :  { %v866_v58 = vpop.xlane.xlu0 %865 }
 0xaac   :  { %v870_v59 = vmul.f32 0.03125, %v866_v58 }
 0xaad   :  { %v869_v60 = vpop.xlane.xlu1 %868 }
 0xaae   :  { %v872_v61 = vadd.f32 1e-12, %v870_v59  ;;  %v871_v62 = vmul.f32 0.03125, %v869_v60 }
 0xab0   :  { %3517 = vrsqrt.f32 %v872_v61  ;;  %v873_v63 = vadd.f32 1e-12, %v871_v62 }
 0xab2   :  { %3519 = vrsqrt.f32 %v873_v63 }
 0xaba   :  { %v3518_v0 = vpop.eup %3517 }
 0xabb   :  { %v876_v2 = vmul.f32 %v3518_v0, %v860_v50 }
 0xabc   :  { %v3520_v3 = vpop.eup %3519 }
 0xabd   :  { %v885_v4 = vmul.f32 %v2936_v1, %v876_v2  ;;  %v877_v5 = vmul.f32 %v3520_v3, %v861_v52  ;;  %v3467_v2 = vld [vmem:[%s3812_s8 + $0x8] sm:$0xff]  }
 0xabf   :  { %v886_v7 = vmul.f32 %v2936_v1, %v877_v5  ;;  %v894_v8 = vadd.f32 %v2937_v6, %v885_v4  ;;  %v3466_v1 = vld [vmem:[%s3812_s8] sm:$0xff]   ;;  %s4250_s8 = sld [smem:[#allocation17_spill]] }
 0xac1   :  { %v895_v9 = vadd.f32 %v2937_v6, %v886_v7 }
 0xac3   :  { %v896_v10 = vpack.c.bf16 %v895_v9, %v894_v8 }
 0xac5   :  { %3210 = vmatmul.mubr.msk.bf16.vlgmr.msra.gmra.mrb[24].mxu1 %vm154_vm0, %v896_v10  ;;  %v2948_v10 = vld [vmem:[%s4247_s17] ss:$0 sm:$0xff] }
 0xac6   :  { %3229 = vmatprep.mubr.msk.bf16.mxu1 %vm3622_vm1, %v3621_v15  ;;  %3226 = vmatpush3.bf16.msra.mxu1 %v3466_v1 }
 0xac7   :  { %3227 = vmatprep.subr.bf16.mxu1 %v3621_v15 }
 0xaca   :  { %3228 = vmatpush3.bf16.msra.mxu1 %v3467_v2 }
 0xacb   :  { %3233 = vmatprep.subr.bf16.mxu1 %v3621_v15 }
 0xb98   :  { %v957_v16 = vpop.f32.mrb[24].mxu1 }
 0xb99   :  { %v958_v39 = vadd.f32 %v2938_v14, %v957_v16  ;;  %v3211_v17 = vpop.f32.mrb[25].mxu1 }
 0xb9a   :  { %v960_v18 = vpop.f32.mrb[26].mxu1 }
 0xb9b   :  { %v964_v19 = vmul.f32 %v958_v39, %v958_v39  ;;  %v961_v20 = vadd.f32 %v2938_v14, %v960_v18  ;;  %v3212_v21 = vpop.f32.mrb[27].mxu1  ;;  %v2949_v14 = vld [vmem:[%s4248_s21] ss:$0 sm:$0xff] }
 0xb9d   :  { %v966_v22 = vmul.f32 %v964_v19, %v958_v39  ;;  %v965_v23 = vmul.f32 %v961_v20, %v961_v20  ;;  %v2950_v19 = vld [vmem:[%s4249_s29] ss:$0 sm:$0xff] }
 0xb9f   :  { %v968_v24 = vmul.f32 0.044715, %v966_v22  ;;  %v967_v25 = vmul.f32 %v965_v23, %v961_v20 }
 0xba1   :  { %v970_v26 = vadd.f32 %v968_v24, %v958_v39  ;;  %v969_v27 = vmul.f32 0.044715, %v967_v25 }
 0xba3   :  { %v972_v28 = vmul.f32 0.7978846, %v970_v26  ;;  %v971_v29 = vadd.f32 %v969_v27, %v961_v20 }
 0xba5   :  { %3521 = vtanh.f32 %v972_v28  ;;  %v973_v30 = vmul.f32 0.7978846, %v971_v29 }
 0xba7   :  { %3523 = vtanh.f32 %v973_v30 }
 0xbaf   :  { %v3522_v33 = vpop.eup %3521 }
 0xbb0   :  { %v976_v34 = vadd.f32 1.0, %v3522_v33 }
 0xbb1   :  { %v3524_v35 = vpop.eup %3523 }
 0xbb2   :  { %v978_v36 = vmul.f32 0.5, %v976_v34  ;;  %v977_v37 = vadd.f32 1.0, %v3524_v35 }
 0xbb4   :  { %v979_v38 = vmul.f32 0.5, %v977_v37  ;;  %v980_v40 = vmul.f32 %v978_v36, %v958_v39 }
 0xbb6   :  { %v981_v41 = vmul.f32 %v979_v38, %v961_v20 }
 0xbb8   :  { %v982_v43 = vpack.c.bf16 %v981_v41, %v980_v40 }
 0xbba   :  { %3222 = vmatmul.mubr.msk.bf16.vlgmr.msra.gmra.mrb[20].mxu0 %vm1022_vm5, %v982_v43 }
 0xbbb   :  { %3241 = vmatprep.mubr.msk.bf16.mxu0 %vm3622_vm1, %v3621_v15 }
 0xc8d   :  { %v1060_v45 = vpop.f32.mrb[20].mxu0 }
 0xc8e   :  { %v1061_v46 = vadd.f32 %v2942_v44, %v1060_v45  ;;  %v3223_v47 = vpop.f32.mrb[21].mxu0 }
 0xc8f   :  { %v1063_v49 = vpop.f32.mrb[22].mxu0 }
 0xc90   :  { %v1064_v50 = vadd.f32 %v2942_v44, %v1063_v49  ;;  %v3224_v51 = vpop.f32.mrb[23].mxu0  ;;  %v1067_v52 = vadd.f32 %v1061_v46, %v894_v8 }
 0xc92   :  { %v1069_v54 = vsel %vm154_vm0, %v1067_v52, 0.0  ;;  %v1068_v55 = vadd.f32 %v1064_v50, %v895_v9 }
 0xc93   :  { %1070 = vadd.xlane.f32.xlu0 %v1069_v54 }
 0xc94   :  { %v1072_v31 = vsel %vm154_vm0, %v1068_v55, 0.0 }
 0xc95   :  { %1073 = vadd.xlane.f32.xlu1 %v1072_v31 }
 0xd20   :  { %v1071_v56 = vpop.xlane.xlu0 %1070 }
 0xd21   :  { %v1075_v32 = vmul.f32 0.03125, %v1071_v56 }
 0xd22   :  { %v1074_v57 = vpop.xlane.xlu1 %1073 }
 0xd23   :  { %v1077_v58 = vsub.f32 %v1067_v52, %v1075_v32  ;;  %v1076_v59 = vmul.f32 0.03125, %v1074_v57 }
 0xd25   :  { %v1078_v60 = vsub.f32 %v1068_v55, %v1076_v59  ;;  %v1079_v61 = vmul.f32 %v1077_v58, %v1077_v58 }
 0xd27   :  { %v1081_v62 = vsel %vm154_vm0, %v1079_v61, 0.0  ;;  %v1080_v63 = vmul.f32 %v1078_v60, %v1078_v60 }
 0xd28   :  { %1082 = vadd.xlane.f32.xlu0 %v1081_v62 }
 0xd29   :  { %v1084_v0 = vsel %vm154_vm0, %v1080_v63, 0.0 }
 0xd2a   :  { %1085 = vadd.xlane.f32.xlu1 %v1084_v0 }
 0xdb5   :  { %v1083_v3 = vpop.xlane.xlu0 %1082 }
 0xdb6   :  { %v1087_v4 = vmul.f32 0.03125, %v1083_v3 }
 0xdb7   :  { %v1086_v5 = vpop.xlane.xlu1 %1085 }
 0xdb8   :  { %v1089_v6 = vadd.f32 1e-12, %v1087_v4  ;;  %v1088_v7 = vmul.f32 0.03125, %v1086_v5  ;;  %v3468_v5 = vld [vmem:[%s3807_s13] sm:$0xff]  }
 0xdba   :  { %3525 = vrsqrt.f32 %v1089_v6  ;;  %v1090_v8 = vadd.f32 1e-12, %v1088_v7 }
 0xdbc   :  { %3527 = vrsqrt.f32 %v1090_v8 }
 0xdc4   :  { %v3526_v9 = vpop.eup %3525 }
 0xdc5   :  { %v1093_v42 = vmul.f32 %v3526_v9, %v1077_v58 }
 0xdc6   :  { %v3528_v11 = vpop.eup %3527 }
 0xdc7   :  { %v1102_v12 = vmul.f32 %v2948_v10, %v1093_v42  ;;  %v1094_v13 = vmul.f32 %v3528_v11, %v1078_v60 }
 0xdc9   :  { %v1103_v16 = vmul.f32 %v2948_v10, %v1094_v13  ;;  %v3980_v39 = vadd.f32 %v2949_v14, %v1102_v12 }
 0xdcb   :  { %v3982_v17 = vadd.f32 %v2949_v14, %v1103_v16 }
 0xdcd   :  { %v1113_v18 = vpack.c.bf16 %v3982_v17, %v3980_v39 }
 0xdcf   :  { %3230 = vmatmul.mubr.msk.bf16.vlgmr.msra.gmra.mrb[28].mxu1 %vm154_vm0, %v1113_v18 }
 0xdd0   :  { %3235 = vmatprep.mubr.msk.bf16.mxu1 %vm3622_vm1, %v3621_v15 }
 0xea2   :  { %v1174_v20 = vpop.f32.mrb[28].mxu1 }
 0xea3   :  { %v1175_v21 = vadd.f32 %v2950_v19, %v1174_v20  ;;  %v3231_v22 = vpop.f32.mrb[29].mxu1 }
 0xea4   :  { %v1177_v23 = vpop.f32.mrb[30].mxu1 }
 0xea5   :  { %v3990_v24 = vpack.c.bf16 %v1175_v21, %v1175_v21  ;;  %v1178_v25 = vadd.f32 %v2950_v19, %v1177_v23  ;;  %v3232_v26 = vpop.f32.mrb[31].mxu1 }
 0xea7   :  { %v3992_v27 = vpack.c.bf16 %v1178_v25, %v1178_v25  ;;  %1189 = vrot.lane.b32.xlu0 %v3990_v24, %s3623_s0 }
 0xea9   :  { %1238 = vrot.lane.b32.xlu1 %v3992_v27, %s3623_s0 }
 0xf19   :  { %v1190_v28 = vpop.permute.xlu0 %1189 }
 0xf1a   :  { %v1195_v29 = vsel %vm280_vm2, %v1190_v28, 0 }
 0xf1b   :  { %3234 = vmatpush3.bf16.xpose.msra.mxu1 %v1195_v29  ;;  %v1239_v30 = vpop.permute.xlu1 %1238 }
 0xf1c   :  { %v1244_v33 = vsel %vm280_vm2, %v1239_v30, 0  ;;  %3245 = vmatprep.subr.bf16.mxu1 %v3621_v15 }
 0xf1d   :  { %3240 = vmatpush3.bf16.xpose.msra.mxu0 %v1244_v33 }
 0xf1e   :  { %3251 = vmatprep.subr.bf16.mxu0 %v3621_v15 }
 0xf22   :  { %3236 = vmatmul.mubr.msk.bf16.vlgmr.msra.gmra.mrb[32].mxu1 %vm280_vm2, %v3990_v24 }
 0xf23   :  { %3247 = vmatprep.mubr.msk.bf16.mxu1 %vm3622_vm1, %v3621_v15 }
 0xf24   :  { %3242 = vmatmul.mubr.msk.bf16.vlgmr.msra.gmra.mrb[24].mxu0 %vm280_vm2, %v3992_v27 }
 0xf25   :  { %3253 = vmatprep.mubr.msk.bf16.mxu0 %vm3622_vm1, %v3621_v15 }
 0xff5   :  { %v1231_v34 = vpop.f32.mrb[32].mxu1 }
 0xff6   :  { %v1286_v35 = vmul.f32 0.25, %v1231_v34  ;;  %v3237_v36 = vpop.f32.mrb[33].mxu1 }
 0xff7   :  { %v1234_v37 = vpop.f32.mrb[34].mxu1  ;;  %v1280_v38 = vpop.f32.mrb[24].mxu0 }
 0xff8   :  { %v1287_v40 = vmul.f32 0.25, %v1280_v38  ;;  %v3238_v41 = vpop.f32.mrb[35].mxu1  ;;  %v3243_v43 = vpop.f32.mrb[25].mxu0  ;;  %v1288_v44 = vadd.f32 %v3868_v48, %v1286_v35 }
 0xff9   :  { %v1283_v45 = vpop.f32.mrb[26].mxu0 }
 0xffa   :  { %v3244_v46 = vpop.f32.mrb[27].mxu0  ;;  %v1290_v47 = vsel %vm392_vm3, %v1288_v44, -inf  ;;  %v1289_v49 = vadd.f32 %v3871_v53, %v1287_v40 }
 0xffb   :  { %1291 = vmax.xlane.f32.xlu1 %v1290_v47 }
 0xffc   :  { %v1293_v50 = vsel %vm392_vm3, %v1289_v49, -inf }
 0xffd   :  { %1294 = vmax.xlane.f32.xlu0 %v1293_v50 }
0x1088   :  { %v1292_v51 = vpop.xlane.xlu1 %1291 }
0x1089   :  { %v1296_v52 = vsub.f32 %v1288_v44, %v1292_v51 }
0x108a   :  { %v1295_v54 = vpop.xlane.xlu0 %1294 }
0x108b   :  { %v1298_v55 = vmul.f32 1.442695, %v1296_v52  ;;  %v1297_v31 = vsub.f32 %v1289_v49, %v1295_v54 }
0x108d   :  { %3529 = vpow2.f32 %v1298_v55  ;;  %v1300_v56 = vmul.f32 1.442695, %v1297_v31 }
0x108f   :  { %3531 = vpow2.f32 %v1300_v56 }
0x1097   :  { %v3530_v32 = vpop.eup %3529 }
0x1098   :  { %v1302_v57 = vsel %vm392_vm3, %v3530_v32, 0.0 }
0x1099   :  { %v3532_v58 = vpop.eup %3531  ;;  %1303 = vadd.xlane.f32.xlu0 %v1302_v57 }
0x109a   :  { %v1305_v59 = vsel %vm392_vm3, %v3532_v58, 0.0 }
0x109b   :  { %1306 = vadd.xlane.f32.xlu1 %v1305_v59 }
0x10ac   :  { %1362 = vrot.lane.b32.xlu1 %v3992_v27, %s3624_s5 }
0x10af   :  { %1314 = vrot.lane.b32.xlu0 %v3990_v24, %s3624_s5 }
0x10b0   :  { %1471 = vrot.lane.b32.xlu1 %v3990_v24, %s3625_s9 }
0x10b3   :  { %1469 = vrot.lane.b32.xlu0 %v3990_v24, %s3626_s14 }
0x10b4   :  { %1521 = vrot.lane.b32.xlu1 %v3992_v27, %s3625_s9 }
0x10b8   :  { %1519 = vrot.lane.b32.xlu1 %v3992_v27, %s3626_s14 }
0x1126   :  { %v1304_v60 = vpop.xlane.xlu0 %1303 }
0x1127   :  { %3533 = vrcp.f32 %v1304_v60 }
0x1128   :  { %v1307_v61 = vpop.xlane.xlu1 %1306 }
0x1129   :  { %3535 = vrcp.f32 %v1307_v61 }
0x112a   :  { %v1315_v62 = vpop.permute.xlu0 %1314 }
0x112b   :  { %v1320_v63 = vsel %vm422_vm4, %v1315_v62, 0 }
0x112c   :  { %3246 = vmatpush3.bf16.msra.mxu1 %v1320_v63  ;;  %v1363_v0 = vpop.permute.xlu1 %1362 }
0x112d   :  { %v1368_v1 = vsel %vm422_vm4, %v1363_v0, 0  ;;  %3257 = vmatprep.subr.bf16.mxu1 %v3621_v15 }
0x112e   :  { %3252 = vmatpush3.bf16.msra.mxu0 %v1368_v1  ;;  %v1470_v42 = vpop.permute.xlu0 %1469 }
0x112f   :  { %3263 = vmatprep.subr.bf16.mxu0 %v3621_v15 }
0x1130   :  { %v1472_v8 = vpop.permute.xlu1 %1471 }
0x1131   :  { %v3534_v2 = vpop.eup %3533  ;;  %v1477_v10 = vsel %vm280_vm2, %v1472_v8, 0 }
0x1132   :  { %v1310_v3 = vmul.f32 %v3534_v2, %v3530_v32 }
0x1133   :  { %v3536_v4 = vpop.eup %3535 }
0x1134   :  { %v1311_v6 = vmul.f32 %v3536_v4, %v3532_v58  ;;  %v1312_v7 = vpack.c.bf16 %v1310_v3, %v1310_v3  ;;  %v1522_v12 = vpop.permute.xlu1 %1521  ;;  %v3469_v3 = vld [vmem:[%s3807_s13 + $0x8] sm:$0xff]   ;;  %s4251_s13 = sld [smem:[#allocation23_spill]] }
0x1135   :  { %v1527_v22 = vsel %vm280_vm2, %v1522_v12, 0  ;;  %v2960_v12 = vld [vmem:[%s4250_s8] ss:$0 sm:$0xff] }
0x1136   :  { %3248 = vmatmul.mubr.msk.bf16.vlgmr.msra.gmra.mrb[36].mxu1 %vm392_vm3, %v1312_v7  ;;  %v1313_v9 = vpack.c.bf16 %v1311_v6, %v1311_v6 }
0x1137   :  { %3258 = vmatpush3.bf16.msra.mxu1 %v3468_v5  ;;  %3259 = vmatprep.mubr.msk.bf16.mxu1 %vm3622_vm1, %v3621_v15 }
0x1138   :  { %3254 = vmatmul.mubr.msk.bf16.vlgmr.msra.gmra.mrb[28].mxu0 %vm392_vm3, %v1313_v9  ;;  %3269 = vmatprep.subr.bf16.mxu1 %v3621_v15  ;;  %v1520_v29 = vpop.permute.xlu1 %1519 }
0x1139   :  { %3264 = vmatpush3.bf16.xpose.msra.mxu0 %v1477_v10  ;;  %3265 = vmatprep.mubr.msk.bf16.mxu0 %vm3622_vm1, %v3621_v15 }
0x113a   :  { %3275 = vmatprep.subr.bf16.mxu0 %v3621_v15 }
0x1140   :  { %3266 = vmatmul.mubr.msk.bf16.vlgmr.msra.gmra.mrb[32].mxu0 %vm280_vm2, %v1470_v42 }
0x1141   :  { %3277 = vmatprep.mubr.msk.bf16.mxu0 %vm3622_vm1, %v3621_v15 }
0x1209   :  { %v1356_v11 = vpop.f32.mrb[36].mxu1 }
0x120a   :  { %v3249_v13 = vpop.f32.mrb[37].mxu1 }
0x120b   :  { %v1359_v14 = vpop.f32.mrb[38].mxu1  ;;  %v1404_v16 = vpop.f32.mrb[28].mxu0 }
0x120c   :  { %v1410_v18 = vpack.c.bf16 %v1404_v16, %v1356_v11  ;;  %v3250_v19 = vpop.f32.mrb[39].mxu1  ;;  %v3255_v20 = vpop.f32.mrb[29].mxu0 }
0x120d   :  { %v1407_v21 = vpop.f32.mrb[30].mxu0 }
0x120e   :  { %v3256_v23 = vpop.f32.mrb[31].mxu0  ;;  %3260 = vmatmul.mubr.msk.bf16.vlgmr.msra.gmra.mrb[40].mxu1 %vm280_vm2, %v1410_v18 }
0x120f   :  { %3270 = vmatpush3.bf16.xpose.msra.mxu1 %v1527_v22  ;;  %3271 = vmatprep.mubr.msk.bf16.mxu1 %vm3622_vm1, %v3621_v15 }
0x1210   :  { %3281 = vmatprep.subr.bf16.mxu1 %v3621_v15 }
0x1213   :  { %v1513_v25 = vpop.f32.mrb[32].mxu0 }
0x1214   :  { %v1569_v26 = vmul.f32 0.25, %v1513_v25  ;;  %v3267_v28 = vpop.f32.mrb[33].mxu0 }
0x1215   :  { %v1516_v30 = vpop.f32.mrb[34].mxu0 }
0x1216   :  { %v3268_v33 = vpop.f32.mrb[35].mxu0  ;;  %3272 = vmatmul.mubr.msk.bf16.vlgmr.msra.gmra.mrb[44].mxu1 %vm280_vm2, %v1520_v29  ;;  %v1571_v34 = vadd.f32 %v3868_v48, %v1569_v26 }
0x1217   :  { %3283 = vmatprep.mubr.msk.bf16.mxu1 %vm3622_vm1, %v3621_v15 }
0x1218   :  { %v1573_v35 = vsel %vm392_vm3, %v1571_v34, -inf }
0x1219   :  { %1574 = vmax.xlane.f32.xlu0 %v1573_v35 }
0x12a6   :  { %v1575_v36 = vpop.xlane.xlu0 %1574 }
0x12a7   :  { %v1579_v37 = vsub.f32 %v1571_v34, %v1575_v36 }
0x12a9   :  { %v1581_v38 = vmul.f32 1.442695, %v1579_v37 }
0x12ab   :  { %3537 = vpow2.f32 %v1581_v38 }
0x12b5   :  { %v3538_v40 = vpop.eup %3537 }
0x12b6   :  { %v1585_v41 = vsel %vm392_vm3, %v3538_v40, 0.0 }
0x12b7   :  { %1586 = vadd.xlane.f32.xlu0 %v1585_v41  ;;  %v3471_v41 = vld [vmem:[%s4251_s13 + $0x8] sm:$0xff]  }
0x12e1   :  { %v1454_v43 = vpop.f32.mrb[40].mxu1 }
0x12e2   :  { %v3261_v44 = vpop.f32.mrb[41].mxu1  ;;  %v1467_v13 = vadd.f32 %v2960_v12, %v1454_v43 }
0x12e3   :  { %v1457_v45 = vpop.f32.mrb[42].mxu1 }
0x12e4   :  { %v3262_v46 = vpop.f32.mrb[43].mxu1  ;;  %v1468_v16 = vadd.f32 %v2960_v12, %v1457_v45 }
0x12e9   :  { %v1563_v47 = vpop.f32.mrb[44].mxu1 }
0x12ea   :  { %v1570_v48 = vmul.f32 0.25, %v1563_v47  ;;  %v3273_v49 = vpop.f32.mrb[45].mxu1 }
0x12eb   :  { %v1566_v50 = vpop.f32.mrb[46].mxu1 }
0x12ec   :  { %v3274_v51 = vpop.f32.mrb[47].mxu1  ;;  %v1572_v52 = vadd.f32 %v3871_v53, %v1570_v48  ;;  %v2967_v50 = vld [vmem:[%s4252_s24] ss:$0 sm:$0xff] }
0x12ee   :  { %v1576_v54 = vsel %vm392_vm3, %v1572_v52, -inf }
0x12ef   :  { %1577 = vmax.xlane.f32.xlu1 %v1576_v54 }
0x1300   :  { %1645 = vrot.lane.b32.xlu1 %v3992_v27, %s3627_s19 }
0x1344   :  { %v1587_v53 = vpop.xlane.xlu0 %1586 }
0x137c   :  { %v1578_v55 = vpop.xlane.xlu1 %1577 }
0x137d   :  { %v1580_v31 = vsub.f32 %v1572_v52, %v1578_v55 }
0x137f   :  { %v1583_v56 = vmul.f32 1.442695, %v1580_v31  ;;  %v2968_v31 = vld [vmem:[%s4253_s30] ss:$0 sm:$0xff] }
0x1380   :  { %v1646_v32 = vpop.permute.xlu1 %1645 }
0x1381   :  { %3539 = vpow2.f32 %v1583_v56  ;;  %v1651_v57 = vsel %vm422_vm4, %v1646_v32, 0 }
0x1382   :  { %3282 = vmatpush3.bf16.msra.mxu1 %v1651_v57  ;;  %3541 = vrcp.f32 %v1587_v53  ;;  %v3473_v53 = vld [vmem:[%s3802_s25 + $0x8] sm:$0xff]  }
0x1383   :  { %3293 = vmatprep.subr.bf16.mxu1 %v3621_v15 }
0x138b   :  { %v3540_v58 = vpop.eup %3539 }
0x138c   :  { %v1588_v59 = vsel %vm392_vm3, %v3540_v58, 0.0  ;;  %v3542_v27 = vpop.eup %3541 }
0x138d   :  { %1589 = vadd.xlane.f32.xlu0 %v1588_v59  ;;  %v1593_v61 = vmul.f32 %v3542_v27, %v3538_v40  ;;  %v3472_v59 = vld [vmem:[%s3802_s25] sm:$0xff]   ;;  %v3474_v27 = vld [vmem:[%s3802_s25 + $0x10] sm:$0xff]  }
0x138f   :  { %v1595_v0 = vpack.c.bf16 %v1593_v61, %v1593_v61  ;;  %v2969_v61 = vld [vmem:[%s4254_s6] ss:$0 sm:$0xff] }
0x13a3   :  { %1597 = vrot.lane.b32.xlu0 %v3990_v24, %s3627_s19 }
0x141a   :  { %v1590_v60 = vpop.xlane.xlu0 %1589 }
0x141b   :  { %3543 = vrcp.f32 %v1590_v60  ;;  %v3475_v60 = vld [vmem:[%s3802_s25 + $0x18] sm:$0xff]   ;;  %s4256_s25 = sld [smem:[#allocation8_spill]] }
0x141e   :  { %v1598_v62 = vpop.permute.xlu0 %1597 }
0x141f   :  { %v1603_v63 = vsel %vm422_vm4, %v1598_v62, 0 }
0x1420   :  { %3276 = vmatpush3.bf16.msra.mxu0 %v1603_v63 }
0x1421   :  { %3287 = vmatprep.subr.bf16.mxu0 %v3621_v15 }
0x1423   :  { %3278 = vmatmul.mubr.msk.bf16.vlgmr.msra.gmra.mrb[36].mxu0 %vm392_vm3, %v1595_v0 }
0x1424   :  { %3289 = vmatprep.mubr.msk.bf16.mxu0 %vm3622_vm1, %v3621_v15  ;;  %3288 = vmatpush3.bf16.msra.mxu0 %v3469_v3 }
0x1425   :  { %v3544_v24 = vpop.eup %3543  ;;  %3301 = vmatprep.subr.bf16.mxu0 %v3621_v15 }
0x1426   :  { %v1594_v1 = vmul.f32 %v3544_v24, %v3540_v58 }
0x1428   :  { %v1596_v2 = vpack.c.bf16 %v1594_v1, %v1594_v1 }
0x142a   :  { %3284 = vmatmul.mubr.msk.bf16.vlgmr.msra.gmra.mrb[48].mxu1 %vm392_vm3, %v1596_v2 }
0x142b   :  { %3297 = vmatprep.mubr.msk.bf16.mxu1 %vm3622_vm1, %v3621_v15 }
0x14f6   :  { %v1639_v4 = vpop.f32.mrb[36].mxu0 }
0x14f7   :  { %v3279_v5 = vpop.f32.mrb[37].mxu0 }
0x14f8   :  { %v1642_v6 = vpop.f32.mrb[38].mxu0 }
0x14f9   :  { %v3280_v7 = vpop.f32.mrb[39].mxu0 }
0x14fd   :  { %v1687_v8 = vpop.f32.mrb[48].mxu1 }
0x14fe   :  { %v1693_v9 = vpack.c.bf16 %v1687_v8, %v1639_v4  ;;  %v3285_v10 = vpop.f32.mrb[49].mxu1 }
0x14ff   :  { %v1690_v42 = vpop.f32.mrb[50].mxu1 }
0x1500   :  { %v3286_v11 = vpop.f32.mrb[51].mxu1  ;;  %3290 = vmatmul.mubr.msk.bf16.vlgmr.msra.gmra.mrb[40].mxu0 %vm280_vm2, %v1693_v9 }
0x1501   :  { %3309 = vmatprep.mubr.msk.bf16.mxu0 %vm3622_vm1, %v3621_v15  ;;  %3302 = vmatpush3.bf16.msra.mxu0 %v3472_v59 }
0x1502   :  { %3303 = vmatprep.subr.bf16.mxu0 %v3621_v15 }
0x1505   :  { %3304 = vmatpush3.bf16.msra.mxu0 %v3473_v53 }
0x1506   :  { %3305 = vmatprep.subr.bf16.mxu0 %v3621_v15 }
0x1509   :  { %3306 = vmatpush3.bf16.msra.mxu0 %v3474_v27  ;;  %v2980_v27 = vld [vmem:[%s4258_s27] ss:$0 sm:$0xff] }
0x150a   :  { %3307 = vmatprep.subr.bf16.mxu0 %v3621_v15 }
0x150d   :  { %3308 = vmatpush3.bf16.msra.mxu0 %v3475_v60 }
0x150e   :  { %3329 = vmatprep.subr.bf16.mxu0 %v3621_v15 }
0x15d3   :  { %v1737_v14 = vpop.f32.mrb[40].mxu0 }
0x15d4   :  { %v1744_v18 = vadd.f32 %v1737_v14, %v1467_v13  ;;  %v3291_v19 = vpop.f32.mrb[41].mxu0 }
0x15d5   :  { %v1740_v20 = vpop.f32.mrb[42].mxu0 }
0x15d6   :  { %v1745_v21 = vadd.f32 %v1740_v20, %v1468_v16  ;;  %v3292_v22 = vpop.f32.mrb[43].mxu0  ;;  %v1746_v23 = vadd.f32 %v1744_v18, %v3980_v39 }
0x15d8   :  { %v1748_v25 = vsel %vm154_vm0, %v1746_v23, 0.0  ;;  %v1747_v26 = vadd.f32 %v1745_v21, %v3982_v17  ;;  %v3470_v17 = vld [vmem:[%s4251_s13] sm:$0xff]  }
0x15d9   :  { %1749 = vadd.xlane.f32.xlu1 %v1748_v25  ;;  %3294 = vmatpush3.bf16.msra.mxu1 %v3470_v17 }
0x15da   :  { %v1751_v28 = vsel %vm154_vm0, %v1747_v26, 0.0  ;;  %3295 = vmatprep.subr.bf16.mxu1 %v3621_v15 }
0x15db   :  { %1752 = vadd.xlane.f32.xlu0 %v1751_v28 }
0x15dd   :  { %3296 = vmatpush3.bf16.msra.mxu1 %v3471_v41 }
0x15de   :  { %3313 = vmatprep.subr.bf16.mxu1 %v3621_v15 }
0x1666   :  { %v1750_v29 = vpop.xlane.xlu1 %1749 }
0x1667   :  { %v1754_v30 = vmul.f32 0.03125, %v1750_v29 }
0x1668   :  { %v1753_v33 = vpop.xlane.xlu0 %1752 }
0x1669   :  { %v1756_v34 = vsub.f32 %v1746_v23, %v1754_v30  ;;  %v1755_v35 = vmul.f32 0.03125, %v1753_v33  ;;  %v2973_v23 = vld [vmem:[%s4255_s12] ss:$0 sm:$0xff] }
0x166b   :  { %v1757_v36 = vsub.f32 %v1747_v26, %v1755_v35  ;;  %v1758_v37 = vmul.f32 %v1756_v34, %v1756_v34 }
0x166d   :  { %v1760_v38 = vsel %vm154_vm0, %v1758_v37, 0.0  ;;  %v1759_v39 = vmul.f32 %v1757_v36, %v1757_v36 }
0x166e   :  { %1761 = vadd.xlane.f32.xlu0 %v1760_v38 }
0x166f   :  { %v1763_v40 = vsel %vm154_vm0, %v1759_v39, 0.0 }
0x1670   :  { %1764 = vadd.xlane.f32.xlu1 %v1763_v40 }
0x16fb   :  { %v1762_v43 = vpop.xlane.xlu0 %1761 }
0x16fc   :  { %v1766_v44 = vmul.f32 0.03125, %v1762_v43 }
0x16fd   :  { %v1765_v45 = vpop.xlane.xlu1 %1764 }
0x16fe   :  { %v1768_v46 = vadd.f32 1e-12, %v1766_v44  ;;  %v1767_v47 = vmul.f32 0.03125, %v1765_v45 }
0x1700   :  { %3545 = vrsqrt.f32 %v1768_v46  ;;  %v1769_v48 = vadd.f32 1e-12, %v1767_v47 }
0x1702   :  { %3547 = vrsqrt.f32 %v1769_v48  ;;  %v3476_v48 = vld [vmem:[%s4256_s25] sm:$0xff]  }
0x170a   :  { %v3546_v49 = vpop.eup %3545 }
0x170b   :  { %v1772_v51 = vmul.f32 %v3546_v49, %v1756_v34  ;;  %v3477_v49 = vld [vmem:[%s4256_s25 + $0x8] sm:$0xff]  }
0x170c   :  { %v3548_v52 = vpop.eup %3547 }
0x170d   :  { %v1781_v54 = vmul.f32 %v2967_v50, %v1772_v51  ;;  %v1773_v55 = vmul.f32 %v3548_v52, %v1757_v36 }
0x170f   :  { %v1782_v56 = vmul.f32 %v2967_v50, %v1773_v55  ;;  %v1790_v32 = vadd.f32 %v2968_v31, %v1781_v54 }
0x1711   :  { %v1791_v57 = vadd.f32 %v2968_v31, %v1782_v56 }
0x1713   :  { %v1792_v58 = vpack.c.bf16 %v1791_v57, %v1790_v32 }
0x1715   :  { %3298 = vmatmul.mubr.msk.bf16.vlgmr.msra.gmra.mrb[52].mxu1 %vm154_vm0, %v1792_v58 }
0x1716   :  { %3317 = vmatprep.mubr.msk.bf16.mxu1 %vm3622_vm1, %v3621_v15  ;;  %3314 = vmatpush3.bf16.msra.mxu1 %v3476_v48 }
0x1717   :  { %3315 = vmatprep.subr.bf16.mxu1 %v3621_v15 }
0x171a   :  { %3316 = vmatpush3.bf16.msra.mxu1 %v3477_v49 }
0x171b   :  { %3321 = vmatprep.subr.bf16.mxu1 %v3621_v15 }
0x17e8   :  { %v1853_v62 = vpop.f32.mrb[52].mxu1 }
0x17e9   :  { %v1854_v63 = vadd.f32 %v2969_v61, %v1853_v62  ;;  %v3299_v0 = vpop.f32.mrb[53].mxu1 }
0x17ea   :  { %v1856_v24 = vpop.f32.mrb[54].mxu1 }
0x17eb   :  { %v1860_v1 = vmul.f32 %v1854_v63, %v1854_v63  ;;  %v1857_v2 = vadd.f32 %v2969_v61, %v1856_v24  ;;  %v3300_v3 = vpop.f32.mrb[55].mxu1  ;;  %v3479_v24 = vld [vmem:[%s4256_s25 + $0x18] sm:$0xff]  }
0x17ec   :  { %v3482_v3 = vld [vmem:[%s4259_s4 + $0x20] sm:$0xff]  }
0x17ed   :  { %v1862_v4 = vmul.f32 %v1860_v1, %v1854_v63  ;;  %v1861_v5 = vmul.f32 %v1857_v2, %v1857_v2  ;;  %v3480_v1 = vld [vmem:[%s4259_s4] sm:$0xff]  }
0x17ef   :  { %v1864_v6 = vmul.f32 0.044715, %v1862_v4  ;;  %v1863_v7 = vmul.f32 %v1861_v5, %v1857_v2  ;;  %v3483_v4 = vld [vmem:[%s4259_s4 + $0x28] sm:$0xff]   ;;  %v3484_v5 = vld [vmem:[%s4260_s28] sm:$0xff]  }
0x17f1   :  { %v1866_v8 = vadd.f32 %v1864_v6, %v1854_v63  ;;  %v1865_v9 = vmul.f32 0.044715, %v1863_v7  ;;  %v3485_v6 = vld [vmem:[%s4260_s28 + $0x8] sm:$0xff]   ;;  %v3486_v7 = vld [vmem:[%s4260_s28 + $0x20] sm:$0xff]  }
0x17f3   :  { %v1868_v10 = vmul.f32 0.7978846, %v1866_v8  ;;  %v1867_v42 = vadd.f32 %v1865_v9, %v1857_v2  ;;  %v3487_v8 = vld [vmem:[%s4260_s28 + $0x28] sm:$0xff]   ;;  %v3488_v9 = vld [vmem:[%s4261_s1] sm:$0xff]  }
0x17f5   :  { %3549 = vtanh.f32 %v1868_v10  ;;  %v1869_v11 = vmul.f32 0.7978846, %v1867_v42 }
0x17f7   :  { %3551 = vtanh.f32 %v1869_v11 }
0x17ff   :  { %v3550_v12 = vpop.eup %3549 }
0x1800   :  { %v1872_v13 = vadd.f32 1.0, %v3550_v12 }
0x1801   :  { %v3552_v14 = vpop.eup %3551 }
0x1802   :  { %v1874_v16 = vmul.f32 0.5, %v1872_v13  ;;  %v1873_v18 = vadd.f32 1.0, %v3552_v14 }
0x1804   :  { %v1875_v19 = vmul.f32 0.5, %v1873_v18  ;;  %v1876_v20 = vmul.f32 %v1874_v16, %v1854_v63  ;;  %v3478_v63 = vld [vmem:[%s4256_s25 + $0x10] sm:$0xff]   ;;  %v2992_v18 = vld [vmem:[%s4262_s2] ss:$0 sm:$0xff] }
0x1806   :  { %v1877_v21 = vmul.f32 %v1875_v19, %v1857_v2  ;;  %v3481_v2 = vld [vmem:[%s4259_s4 + $0x8] sm:$0xff]  }
0x1808   :  { %v1878_v22 = vpack.c.bf16 %v1877_v21, %v1876_v20 }
0x180a   :  { %3310 = vmatmul.mubr.msk.bf16.vlgmr.msra.gmra.mrb[44].mxu0 %vm1022_vm5, %v1878_v22 }
0x180b   :  { %3331 = vmatprep.mubr.msk.bf16.mxu0 %vm3622_vm1, %v3621_v15  ;;  %3330 = vmatpush3.bf16.msra.mxu0 %v3488_v9 }
0x180c   :  { %3343 = vmatprep.subr.bf16.mxu0 %v3621_v15 }
0x18dd   :  { %v1955_v25 = vpop.f32.mrb[44].mxu0 }
0x18de   :  { %v1956_v26 = vadd.f32 %v2973_v23, %v1955_v25  ;;  %v3311_v28 = vpop.f32.mrb[45].mxu0 }
0x18df   :  { %v1958_v29 = vpop.f32.mrb[46].mxu0 }
0x18e0   :  { %v1959_v30 = vadd.f32 %v2973_v23, %v1958_v29  ;;  %v3312_v33 = vpop.f32.mrb[47].mxu0  ;;  %v1962_v34 = vadd.f32 %v1956_v26, %v1790_v32  ;;  %v2979_v32 = vld [vmem:[%s4257_s20] ss:$0 sm:$0xff] }
0x18e2   :  { %v1964_v35 = vsel %vm154_vm0, %v1962_v34, 0.0  ;;  %v1963_v36 = vadd.f32 %v1959_v30, %v1791_v57 }
0x18e3   :  { %1965 = vadd.xlane.f32.xlu0 %v1964_v35 }
0x18e4   :  { %v1967_v37 = vsel %vm154_vm0, %v1963_v36, 0.0 }
0x18e5   :  { %1968 = vadd.xlane.f32.xlu1 %v1967_v37 }
0x1970   :  { %v1966_v38 = vpop.xlane.xlu0 %1965 }
0x1971   :  { %v1970_v39 = vmul.f32 0.03125, %v1966_v38 }
0x1972   :  { %v1969_v40 = vpop.xlane.xlu1 %1968 }
0x1973   :  { %v1972_v17 = vsub.f32 %v1962_v34, %v1970_v39  ;;  %v1971_v41 = vmul.f32 0.03125, %v1969_v40 }
0x1975   :  { %v1973_v43 = vsub.f32 %v1963_v36, %v1971_v41  ;;  %v1974_v44 = vmul.f32 %v1972_v17, %v1972_v17 }
0x1977   :  { %v1976_v45 = vsel %vm154_vm0, %v1974_v44, 0.0  ;;  %v1975_v46 = vmul.f32 %v1973_v43, %v1973_v43 }
0x1978   :  { %1977 = vadd.xlane.f32.xlu0 %v1976_v45 }
0x1979   :  { %v1979_v47 = vsel %vm154_vm0, %v1975_v46, 0.0 }
0x197a   :  { %1980 = vadd.xlane.f32.xlu1 %v1979_v47 }
0x1a05   :  { %v1978_v50 = vpop.xlane.xlu0 %1977 }
0x1a06   :  { %v1982_v51 = vmul.f32 0.03125, %v1978_v50 }
0x1a07   :  { %v1981_v52 = vpop.xlane.xlu1 %1980 }
0x1a08   :  { %v1984_v54 = vadd.f32 1e-12, %v1982_v51  ;;  %v1983_v55 = vmul.f32 0.03125, %v1981_v52 }
0x1a0a   :  { %3553 = vrsqrt.f32 %v1984_v54  ;;  %v1985_v31 = vadd.f32 1e-12, %v1983_v55 }
0x1a0c   :  { %3555 = vrsqrt.f32 %v1985_v31 }
0x1a14   :  { %v3554_v56 = vpop.eup %3553 }
0x1a15   :  { %v1988_v57 = vmul.f32 %v3554_v56, %v1972_v17 }
0x1a16   :  { %v3556_v58 = vpop.eup %3555 }
0x1a17   :  { %v1997_v59 = vmul.f32 %v2979_v32, %v1988_v57  ;;  %v1989_v53 = vmul.f32 %v3556_v58, %v1973_v43 }
0x1a19   :  { %v1998_v60 = vmul.f32 %v2979_v32, %v1989_v53  ;;  %v2006_v61 = vadd.f32 %v2980_v27, %v1997_v59 }
0x1a1b   :  { %v2007_v62 = vadd.f32 %v2980_v27, %v1998_v60  ;;  %v3489_v60 = vld [vmem:[%s4259_s4 + $0x10] sm:$0xff]  }
0x1a1d   :  { %v4118_v0 = vpack.c.bf16 %v2007_v62, %v2006_v61 }
0x1a1f   :  { %3318 = vmatmul.mubr.msk.bf16.vlgmr.msra.gmra.mrb[56].mxu1 %vm154_vm0, %v4118_v0 }
0x1a20   :  { %3322 = vmatpush3.bf16.msra.mxu1 %v3478_v63  ;;  %3325 = vmatprep.mubr.msk.bf16.mxu1 %vm3622_vm1, %v3621_v15  ;;  %v3490_v63 = vld [vmem:[%s4259_s4 + $0x18] sm:$0xff]  }
0x1a21   :  { %3323 = vmatprep.subr.bf16.mxu1 %v3621_v15 }
0x1a24   :  { %3324 = vmatpush3.bf16.msra.mxu1 %v3479_v24 }
0x1a25   :  { %3335 = vmatprep.subr.bf16.mxu1 %v3621_v15 }
0x1a27   :  { %3326 = vmatmul.mubr.msk.bf16.vlgmr.msra.gmra.mrb[60].mxu1 %vm154_vm0, %v4118_v0 }
0x1a28   :  { %3336 = vmatpush3.bf16.msra.mxu1 %v3480_v1  ;;  %3339 = vmatprep.mubr.msk.bf16.mxu1 %vm3622_vm1, %v3621_v15 }
0x1a29   :  { %3337 = vmatprep.subr.bf16.mxu1 %v3621_v15 }
0x1a2c   :  { %3338 = vmatpush3.bf16.msra.mxu1 %v3481_v2 }
0x1a2d   :  { %3351 = vmatprep.subr.bf16.mxu1 %v3621_v15 }
0x1a2f   :  { %3340 = vmatmul.mubr.msk.bf16.vlgmr.msra.gmra.mrb[64].mxu1 %vm154_vm0, %v4118_v0 }
0x1a30   :  { %3352 = vmatpush3.bf16.msra.mxu1 %v3482_v3  ;;  %3355 = vmatprep.mubr.msk.bf16.mxu1 %vm3622_vm1, %v3621_v15  ;;  %v3491_v3 = vld [vmem:[%s4261_s1 + $0x8] sm:$0xff]  }
0x1a31   :  { %3353 = vmatprep.subr.bf16.mxu1 %v3621_v15 }
0x1a34   :  { %3354 = vmatpush3.bf16.msra.mxu1 %v3483_v4 }
0x1a35   :  { %3365 = vmatprep.subr.bf16.mxu1 %v3621_v15 }
0x1a37   :  { %3356 = vmatmul.mubr.msk.bf16.vlgmr.msra.gmra.mrb[68].mxu1 %vm154_vm0, %v4118_v0 }
0x1a38   :  { %3366 = vmatpush3.bf16.msra.mxu1 %v3484_v5  ;;  %3369 = vmatprep.mubr.msk.bf16.mxu1 %vm3622_vm1, %v3621_v15 }
0x1a39   :  { %3367 = vmatprep.subr.bf16.mxu1 %v3621_v15 }
0x1a3c   :  { %3368 = vmatpush3.bf16.msra.mxu1 %v3485_v6 }
0x1a3d   :  { %3381 = vmatprep.subr.bf16.mxu1 %v3621_v15 }
0x1a3f   :  { %3370 = vmatmul.mubr.msk.bf16.vlgmr.msra.gmra.mrb[72].mxu1 %vm154_vm0, %v4118_v0 }
0x1a40   :  { %3382 = vmatpush3.bf16.msra.mxu1 %v3486_v7  ;;  %3385 = vmatprep.mubr.msk.bf16.mxu1 %vm3622_vm1, %v3621_v15 }
0x1a41   :  { %3383 = vmatprep.subr.bf16.mxu1 %v3621_v15 }
0x1a44   :  { %3384 = vmatpush3.bf16.msra.mxu1 %v3487_v8 }
0x1a47   :  { %3386 = vmatmul.mubr.msk.bf16.vlgmr.msra.gmra.mrb[76].mxu1 %vm154_vm0, %v4118_v0 }
0x1af2   :  { %v2076_v10 = vpop.f32.mrb[56].mxu1 }
0x1af3   :  { %v3319_v42 = vpop.f32.mrb[57].mxu1 }
0x1af4   :  { %v2079_v11 = vpop.f32.mrb[58].mxu1 }
0x1af5   :  { %v3320_v12 = vpop.f32.mrb[59].mxu1 }
0x1afa   :  { %v2136_v13 = vpop.f32.mrb[60].mxu1 }
0x1afb   :  { %v2145_v14 = vrot.slane %v2136_v13, 1  ;;  %v3327_v16 = vpop.f32.mrb[61].mxu1 }
0x1afc   :  { %v2139_v19 = vpop.f32.mrb[62].mxu1 }
0x1afd   :  { %v2149_v20 = vadd.f32 %v2145_v14, %v2076_v10  ;;  %v2146_v21 = vrot.slane %v2139_v19, 1  ;;  %v3328_v22 = vpop.f32.mrb[63].mxu1 }
0x1aff   :  { %v2158_v23 = vadd.f32 %v2992_v18, %v2149_v20  ;;  %v2150_v25 = vadd.f32 %v2146_v21, %v2079_v11  ;;  %v3012_v11 = vld [vmem:[%s4263_s7] ss:$0 sm:$0xff] }
0x1b01   :  { %v2160_v26 = vmax.f32 %v2158_v23, 0.0  ;;  %v2159_v28 = vadd.f32 %v2992_v18, %v2150_v25 }
0x1b02   :  { %v2286_v29 = vpop.f32.mrb[64].mxu1 }
0x1b03   :  { %v2163_v30 = vsel %vm2162_vm6, %v2160_v26, -inf  ;;  %v2161_v33 = vmax.f32 %v2159_v28, 0.0  ;;  %v3341_v34 = vpop.f32.mrb[65].mxu1 }
0x1b04   :  { %v2164_v35 = vrot.slane %v2163_v30, 4  ;;  %v2289_v36 = vpop.f32.mrb[66].mxu1 }
0x1b05   :  { %v2170_v37 = vsel %vm2162_vm6, %v2161_v33, -inf  ;;  %v3342_v38 = vpop.f32.mrb[67].mxu1 }
0x1b06   :  { %v2165_v39 = vmax.f32 %v2163_v30, %v2164_v35  ;;  %v2171_v40 = vrot.slane %v2170_v37, 4 }
0x1b08   :  { %v2166_v17 = vrot.slane %v2165_v39, 2  ;;  %v2172_v41 = vmax.f32 %v2170_v37, %v2171_v40 }
0x1b0a   :  { %v2167_v43 = vmax.f32 %v2165_v39, %v2166_v17  ;;  %v2173_v44 = vrot.slane %v2172_v41, 2  ;;  %v2412_v45 = vpop.f32.mrb[68].mxu1 }
0x1b0b   :  { %v3357_v46 = vpop.f32.mrb[69].mxu1  ;;  %v2421_v8 = vrot.slane %v2412_v45, 2  ;;  %v3492_v45 = vld [vmem:[%s4260_s28 + $0x10] sm:$0xff]  }
0x1b0c   :  { %v2168_v47 = vrot.slane %v2167_v43, 1  ;;  %v2174_v48 = vmax.f32 %v2172_v41, %v2173_v44  ;;  %v2415_v49 = vpop.f32.mrb[70].mxu1 }
0x1b0d   :  { %v3358_v50 = vpop.f32.mrb[71].mxu1  ;;  %v2422_v12 = vrot.slane %v2415_v49, 2  ;;  %v3495_v49 = vld [vmem:[%s4260_s28 + $0x38] sm:$0xff]  }
0x1b0e   :  { %v2169_v51 = vmax.f32 %v2167_v43, %v2168_v47  ;;  %v2175_v52 = vrot.slane %v2174_v48, 1  ;;  %v3493_v47 = vld [vmem:[%s4260_s28 + $0x18] sm:$0xff]   ;;  %v3496_v50 = vld [vmem:[%s4261_s1 + $0x10] sm:$0xff]  }
0x1b10   :  { %v2177_v54 = vpack.c.bf16 %v2169_v51, %v2169_v51  ;;  %v2176_v55 = vmax.f32 %v2174_v48, %v2175_v52  ;;  %v3494_v48 = vld [vmem:[%s4260_s28 + $0x30] sm:$0xff]  }
0x1b12   :  { %v2178_v31 = vpack.c.bf16 %v2176_v55, %v2176_v55  ;;  %v4163_v56 = vpop.f32.mrb[72].mxu1  ;;  %v2181_v57 = vunpack.c.l.b16 %v2177_v54 }
0x1b13   :  { %v3371_v32 = vpop.f32.mrb[73].mxu1 }
0x1b14   :  { %v2182_v58 = vunpack.c.l.b16 %v2178_v31  ;;  %v4165_v59 = vpop.f32.mrb[74].mxu1 }
0x1b15   :  { %v3372_v53 = vpop.f32.mrb[75].mxu1 }
0x1b16   :  { %v2184_v27 = vsel %vm2183_vm7, %v2182_v58, %v2181_v57 }
0x1b17   :  { %v2185_v61 = vpack.c.b16 %v2184_v27, %v2184_v27 }
0x1b19   :  { %3332 = vmatmul.mubr.msk.bf16.vlgmr.msra.gmra.mrb[48].mxu0 %vm280_vm2, %v2185_v61 }
0x1b1a   :  { %3344 = vmatpush3.bf16.msra.mxu0 %v3489_v60  ;;  %v4170_v62 = vpop.f32.mrb[76].mxu1  ;;  %3347 = vmatprep.mubr.msk.bf16.mxu0 %vm3622_vm1, %v3621_v15 }
0x1b1b   :  { %v3387_v24 = vpop.f32.mrb[77].mxu1  ;;  %3345 = vmatprep.subr.bf16.mxu0 %v3621_v15  ;;  %v2696_v31 = vrot.slane %v4170_v62, 2 }
0x1b1c   :  { %v4176_v1 = vpop.f32.mrb[78].mxu1  ;;  %v3039_v24 = vld [vmem:[%s4264_s10] ss:$0 sm:$0xff] }
0x1b1d   :  { %v3388_v2 = vpop.f32.mrb[79].mxu1  ;;  %v2697_v53 = vrot.slane %v4176_v1, 2 }
0x1b1e   :  { %3346 = vmatpush3.bf16.msra.mxu0 %v3490_v63 }
0x1b1f   :  { %3359 = vmatprep.subr.bf16.mxu0 %v3621_v15 }
0x1b21   :  { %3348 = vmatmul.mubr.msk.bf16.vlgmr.msra.gmra.mrb[52].mxu0 %vm154_vm0, %v4118_v0 }
0x1b22   :  { %3361 = vmatprep.mubr.msk.bf16.mxu0 %vm3622_vm1, %v3621_v15  ;;  %3360 = vmatpush3.bf16.msra.mxu0 %v3491_v3 }
0x1b23   :  { %3373 = vmatprep.subr.bf16.mxu0 %v3621_v15 }
0x1bf4   :  { %v2346_v4 = vpop.f32.mrb[52].mxu0 }
0x1bf5   :  { %v2355_v5 = vrot.slane %v2346_v4, 1  ;;  %v3349_v6 = vpop.f32.mrb[53].mxu0 }
0x1bf6   :  { %v2349_v7 = vpop.f32.mrb[54].mxu0 }
0x1bf7   :  { %v2359_v9 = vadd.f32 %v2355_v5, %v2286_v29  ;;  %v2356_v10 = vrot.slane %v2349_v7, 1  ;;  %v3350_v42 = vpop.f32.mrb[55].mxu0 }
0x1bf9   :  { %v2425_v13 = vadd.f32 %v2421_v8, %v2359_v9  ;;  %v2360_v14 = vadd.f32 %v2356_v10, %v2289_v36 }
0x1bfb   :  { %v2434_v16 = vadd.f32 %v3012_v11, %v2425_v13  ;;  %v2426_v18 = vadd.f32 %v2422_v12, %v2360_v14 }
0x1bfd   :  { %v2436_v19 = vmax.f32 %v2434_v16, 0.0  ;;  %v2435_v20 = vadd.f32 %v3012_v11, %v2426_v18 }
0x1bff   :  { %v2439_v21 = vsel %vm2438_vm8, %v2436_v19, -inf  ;;  %v2437_v22 = vmax.f32 %v2435_v20, 0.0 }
0x1c00   :  { %v2440_v23 = vrot.slane %v2439_v21, 4 }
0x1c01   :  { %v2446_v25 = vsel %vm2438_vm8, %v2437_v22, -inf }
0x1c02   :  { %v2441_v26 = vmax.f32 %v2439_v21, %v2440_v23  ;;  %v2447_v28 = vrot.slane %v2446_v25, 4 }
0x1c04   :  { %v2442_v30 = vrot.slane %v2441_v26, 2  ;;  %v2448_v29 = vmax.f32 %v2446_v25, %v2447_v28 }
0x1c06   :  { %v2443_v33 = vmax.f32 %v2441_v26, %v2442_v30  ;;  %v2449_v34 = vrot.slane %v2448_v29, 2 }
0x1c08   :  { %v2444_v35 = vrot.slane %v2443_v33, 1  ;;  %v2450_v37 = vmax.f32 %v2448_v29, %v2449_v34  ;;  %v2981_v29 = vld [vmem:[%s4265_s11] ss:$0 sm:$0xff] }
0x1c0a   :  { %v2445_v36 = vmax.f32 %v2443_v33, %v2444_v35  ;;  %v2451_v38 = vrot.slane %v2450_v37, 1 }
0x1c0c   :  { %v2453_v39 = vpack.c.bf16 %v2445_v36, %v2445_v36  ;;  %v2452_v40 = vmax.f32 %v2450_v37, %v2451_v38 }
0x1c0e   :  { %v2454_v17 = vpack.c.bf16 %v2452_v40, %v2452_v40  ;;  %v2457_v41 = vunpack.c.l.b16 %v2453_v39 }
0x1c10   :  { %v2458_v43 = vunpack.c.l.b16 %v2454_v17 }
0x1c12   :  { %v2459_v44 = vsel %vm2183_vm7, %v2458_v43, %v2457_v41 }
0x1c13   :  { %v2460_v46 = vpack.c.b16 %v2459_v44, %v2459_v44 }
0x1c15   :  { %3362 = vmatmul.mubr.msk.bf16.vlgmr.msra.gmra.mrb[48].mxu0 %vm280_vm2, %v2460_v46 }
0x1c16   :  { %3374 = vmatpush3.bf16.msra.mxu0 %v3492_v45  ;;  %3377 = vmatprep.mubr.msk.bf16.mxu0 %vm3622_vm1, %v3621_v15 }
0x1c17   :  { %3375 = vmatprep.subr.bf16.mxu0 %v3621_v15 }
0x1c1a   :  { %3376 = vmatpush3.bf16.msra.mxu0 %v3493_v47 }
0x1c1b   :  { %3389 = vmatprep.subr.bf16.mxu0 %v3621_v15 }
0x1c1d   :  { %3378 = vmatmul.mubr.msk.bf16.vlgmr.msra.gmra.mrb[56].mxu0 %vm154_vm0, %v4118_v0 }
0x1c1e   :  { %3390 = vmatpush3.bf16.msra.mxu0 %v3494_v48  ;;  %3393 = vmatprep.mubr.msk.bf16.mxu0 %vm3622_vm1, %v3621_v15 }
0x1c1f   :  { %3391 = vmatprep.subr.bf16.mxu0 %v3621_v15 }
0x1c22   :  { %3392 = vmatpush3.bf16.msra.mxu0 %v3495_v49 }
0x1c23   :  { %3397 = vmatprep.subr.bf16.mxu0 %v3621_v15 }
0x1c25   :  { %3394 = vmatmul.mubr.msk.bf16.vlgmr.msra.gmra.mrb[60].mxu0 %vm154_vm0, %v4118_v0 }
0x1c26   :  { %3399 = vmatprep.mubr.msk.bf16.mxu0 %vm3622_vm1, %v3621_v15  ;;  %3398 = vmatpush3.bf16.msra.mxu0 %v3496_v50 }
0x1cf0   :  { %v2621_v51 = vpop.f32.mrb[56].mxu0 }
0x1cf1   :  { %v2630_v52 = vrot.slane %v2621_v51, 1  ;;  %v3379_v54 = vpop.f32.mrb[57].mxu0 }
0x1cf2   :  { %v2624_v55 = vpop.f32.mrb[58].mxu0 }
0x1cf3   :  { %v2634_v32 = vadd.f32 %v2630_v52, %v4163_v56  ;;  %v2631_v57 = vrot.slane %v2624_v55, 1  ;;  %v3380_v58 = vpop.f32.mrb[59].mxu0 }
0x1cf5   :  { %v2635_v0 = vadd.f32 %v2631_v57, %v4165_v59  ;;  %v2700_v27 = vadd.f32 %v2696_v31, %v2634_v32 }
0x1cf7   :  { %v2701_v60 = vadd.f32 %v2697_v53, %v2635_v0 }
0x1cf8   :  { %v2753_v15 = vpop.f32.mrb[60].mxu0 }
0x1cf9   :  { %v2762_v61 = vrot.slane %v2753_v15, 3  ;;  %v3395_v63 = vpop.f32.mrb[61].mxu0 }
0x1cfa   :  { %v2756_v2 = vpop.f32.mrb[62].mxu0 }
0x1cfb   :  { %v2766_v3 = vadd.f32 %v2762_v61, %v2700_v27  ;;  %v2763_v4 = vrot.slane %v2756_v2, 3  ;;  %v3396_v5 = vpop.f32.mrb[63].mxu0 }
0x1cfd   :  { %v2775_v6 = vadd.f32 %v3039_v24, %v2766_v3  ;;  %v2767_v62 = vadd.f32 %v2763_v4, %v2701_v60 }
0x1cff   :  { %v2777_v56 = vmax.f32 %v2775_v6, 0.0  ;;  %v2776_v7 = vadd.f32 %v3039_v24, %v2767_v62 }
0x1d01   :  { %v2780_v8 = vsel %vm2779_vm9, %v2777_v56, -inf  ;;  %v2778_v9 = vmax.f32 %v2776_v7, 0.0 }
0x1d02   :  { %v2781_v1 = vrot.slane %v2780_v8, 4 }
0x1d03   :  { %v2787_v10 = vsel %vm2779_vm9, %v2778_v9, -inf }
0x1d04   :  { %v2782_v59 = vmax.f32 %v2780_v8, %v2781_v1  ;;  %v2788_v42 = vrot.slane %v2787_v10, 4 }
0x1d06   :  { %v2783_v11 = vrot.slane %v2782_v59, 2  ;;  %v2789_v12 = vmax.f32 %v2787_v10, %v2788_v42 }
0x1d08   :  { %v2784_v13 = vmax.f32 %v2782_v59, %v2783_v11  ;;  %v2790_v14 = vrot.slane %v2789_v12, 2 }
0x1d0a   :  { %v2785_v16 = vrot.slane %v2784_v13, 1  ;;  %v2791_v18 = vmax.f32 %v2789_v12, %v2790_v14 }
0x1d0c   :  { %v2786_v19 = vmax.f32 %v2784_v13, %v2785_v16  ;;  %v2792_v20 = vrot.slane %v2791_v18, 1 }
0x1d0e   :  { %v2794_v21 = vpack.c.bf16 %v2786_v19, %v2786_v19  ;;  %v2793_v22 = vmax.f32 %v2791_v18, %v2792_v20 }
0x1d10   :  { %v2795_v23 = vpack.c.bf16 %v2793_v22, %v2793_v22  ;;  %v2798_v25 = vunpack.c.l.b16 %v2794_v21 }
0x1d12   :  { %v2799_v26 = vunpack.c.l.b16 %v2795_v23 }
0x1d14   :  { %v2800_v28 = vsel %vm2183_vm7, %v2799_v26, %v2798_v25 }
0x1d15   :  { %v2801_v30 = vpack.c.b16 %v2800_v28, %v2800_v28 }
0x1d17   :  { %3400 = vmatmul.mubr.msk.bf16.vlgmr.msra.gmra.mrb[48].mxu0 %vm280_vm2, %v2801_v30 }
0x1dea   :  { %v2845_v33 = vpop.f32.mrb[48].mxu0 }
0x1deb   :  { %v3403_v34 = vadd.f32 %v2981_v29, %v2845_v33  ;;  %v3401_v35 = vpop.f32.mrb[49].mxu0 }
0x1dec   :  { %v2848_v37 = vpop.f32.mrb[50].mxu0 }
0x1ded   :  { %v3402_v36 = vpop.f32.mrb[51].mxu0  ;;  %v2853_v38 = vsel %vm2852_vm10, %v3403_v34, -inf }
0x1dee   :  { %2854 = vmax.xlane.f32.xlu0 %v2853_v38 }
0x1e7b   :  { %v2855_v39 = vpop.xlane.xlu0 %2854 }
0x1e7c   :  { %v2856_v40 = vsub.f32 %v3403_v34, %v2855_v39 }
0x1e7e   :  { %v2857_v17 = vmul.f32 1.442695, %v2856_v40 }
0x1e80   :  { %3557 = vpow2.f32 %v2857_v17 }
0x1e8a   :  { %v3558_v41 = vpop.eup %3557 }
0x1e8b   :  { %v2859_v43 = vsel %vm2852_vm10, %v3558_v41, 0.0 }
0x1e8c   :  { %2860 = vadd.xlane.f32.xlu1 %v2859_v43 }
0x1f19   :  { %v2861_v44 = vpop.xlane.xlu1 %2860 }
0x1f1a   :  { %3559 = vrcp.f32 %v2861_v44 }
0x1f24   :  { %v3560_v45 = vpop.eup %3559 }
0x1f25   :  { %v2863_v46 = vmul.f32 %v3560_v45, %v3558_v41 }
0x1f27   :  { %2864 = vst.msk [vmem:[#allocation2] sm:$0x3] %vm2852_vm10, %v2863_v46 }
0x1f28   :  { %3572 = shalt.err (!%p3569_p4)
}
0x1f29   :  { %s3573_s22 = scalar_lea.hbm %s3817_s3, 32 }
0x1f2a   :  { %p3574_p5 = scmp.ne.s32.totalorder %s3817_s3, %s3573_s22  ;;  %p3577_p6 = scmp.lt.u32.totalorder %s3573_s22, %s3817_s3 }
0x1f2c   :  { %p3579_p7 = pnand %p3577_p6, %p3574_p5 }
0x1f2e   :  { %3582 = shalt.err (!%p3579_p7)
}
0x1f2f   :  { %2874 = dma.vmem_to_hbm [thread:$0]  %s2872_s16, 32, %s3817_s3, [#allocation3]  }
0x1f30   :  { %3583 = dma.done.wait [#allocation3], 32  }
0x1f31   :  { %3584 = vsyncadd [#allocation3], 4294967264 }
0x1f32   :  { %2878 = vsyncpa [#allocation3], 1 }

</bundles_post_ra>
